<compile_context>
chip_gen: v5e
topology: v5e:2x2
jax: 0.10.0
libtpu: 0.0.40
codegen_flags: <defaults>
</compile_context>

<pallas_src>
import jax
import jax.numpy as jnp
from jax.experimental import pallas as pl
from jax.experimental.pallas import tpu as pltpu

BN_EPS = 1e-5


# ----------------------------------------------------------------------------- kernel
def make_linear_block_kernel(n, f, opad):
    """Fused kernel for one grid step: one [n, f] instance -> [n, opad] output."""
    inv_n = 1.0 / n

    def _bn(h, gamma, beta):
        # Training-mode BatchNorm1d: batch mean, biased variance.
        # Single reduction pass (sum, sum of squares), folded scale/shift; rsqrt -> EUP.
        s = jnp.sum(h, axis=0, keepdims=True)
        sq = jnp.sum(h * h, axis=0, keepdims=True)
        mean = s * inv_n
        var = jnp.maximum(sq * inv_n - mean * mean, 0.0)
        scale = gamma * jax.lax.rsqrt(var + BN_EPS)
        shift = beta - mean * scale
        return h * scale + shift

    def _prelu(h, a):
        return jnp.where(h >= 0.0, h, a * h)

    def _dot(a_f32, w_bf16):
        # bf16 MXU operands, f32 accumulation.
        return jnp.dot(a_f32.astype(jnp.bfloat16), w_bf16,
                       preferred_element_type=jnp.float32)

    def kernel(x_ref,                      # [n, f] f32 (per grid step)
               w1_ref, w234_ref, w5_ref,   # bf16: [f,SP], [3,SP,SP], [SP,opad] (resident)
               vec_ref,                    # [16, SP] f32: gammas/betas/b5/PReLU slopes
               o_ref):                     # [n, opad] f32
        x = x_ref[...]
        vec = vec_ref[...]

        g1, be1 = vec[0:1, :f], vec[1:2, :f]
        g2, be2 = vec[2:3, :], vec[3:4, :]
        g3, be3 = vec[4:5, :], vec[5:6, :]
        g4, be4 = vec[6:7, :], vec[7:8, :]
        g5, be5 = vec[8:9, :], vec[9:10, :]
        b5 = vec[10:11, :opad]
        a2, a3, a4, a5 = vec[11:12, :], vec[12:13, :], vec[13:14, :], vec[14:15, :]

        # lin1..lin4 linear biases are dropped: a per-feature constant shift is exactly
        # cancelled by the next training-mode BN's mean subtraction. Only b5 survives.
        h = _dot(_bn(x, g1, be1), w1_ref[...])                      # lin1: BN -> Linear
        t = _dot(_prelu(_bn(h, g2, be2), a2), w234_ref[0])          # lin2
        u = _dot(_prelu(_bn(t, g3, be3), a3), w234_ref[1])          # lin3
        h = (u + h) * 0.5
        v = _dot(_prelu(_bn(h, g4, be4), a4), w234_ref[2])          # lin4
        h = (v + h) * 0.5
        o_ref[...] = _dot(_prelu(_bn(h, g5, be5), a5), w5_ref[...]) + b5   # lin5

    return kernel


# ------------------------------------------------------------------------ params/pack
def init_params(key, n_feats):
    """PyTorch-shaped params (f32, weights stored [in, out] == W_pt.T)."""
    snd = 6 * n_feats
    dims = [(n_feats, snd), (snd, snd), (snd, snd), (snd, snd), (snd, n_feats)]
    params = []
    for (din, dout) in dims:
        key, kw, kb = jax.random.split(key, 3)
        bound = 1.0 / jnp.sqrt(jnp.float32(din))
        w = jax.random.uniform(kw, (din, dout), jnp.float32, -bound, bound)
        b = jax.random.uniform(kb, (1, dout), jnp.float32, -bound, bound)
        gamma = jnp.ones((1, din), jnp.float32)   # BatchNorm1d weight init = 1
        beta = jnp.zeros((1, din), jnp.float32)   # BatchNorm1d bias init = 0
        params.append((gamma, beta, w, b))
    alphas = jnp.full((4,), 0.25, jnp.float32)    # PReLU default slope, lin2..lin5
    return alphas, params


def pack_params(alphas, params, n_feats):
    """One-time repacking into the kernel's DMA-friendly, lane-dense layout."""
    f = n_feats
    s = 6 * n_feats
    sp = pl.cdiv(s, 128) * 128                    # hidden dim padded lane-dense (192 -> 256)
    opad = pl.cdiv(f, 128) * 128                  # output dim padded lane-dense (32 -> 128)

    (g1, be1, w1, _b1), (g2, be2, w2, _b2), (g3, be3, w3, _b3), \
        (g4, be4, w4, _b4), (g5, be5, w5, b5) = params

    def pad2(w, rows, cols):
        return jnp.pad(w, ((0, rows - w.shape[0]), (0, cols - w.shape[1])))

    w1p = pad2(w1, f, sp).astype(jnp.bfloat16)
    w234 = jnp.stack([pad2(w2, sp, sp), pad2(w3, sp, sp), pad2(w4, sp, sp)],
                     axis=0).astype(jnp.bfloat16)
    w5p = pad2(w5, sp, opad).astype(jnp.bfloat16)

    def row(v):
        v = jnp.asarray(v, jnp.float32).reshape(-1)
        return jnp.pad(v, (0, sp - v.shape[0]))

    vec = jnp.stack([
        row(g1), row(be1),                        # 0,1
        row(g2), row(be2),                        # 2,3
        row(g3), row(be3),                        # 4,5
        row(g4), row(be4),                        # 6,7
        row(g5), row(be5),                        # 8,9
        row(b5),                                  # 10  (b1..b4 are mathematically dead)
        jnp.full((sp,), alphas[0], jnp.float32),  # 11  PReLU slopes as broadcast rows
        jnp.full((sp,), alphas[1], jnp.float32),  # 12
        jnp.full((sp,), alphas[2], jnp.float32),  # 13
        jnp.full((sp,), alphas[3], jnp.float32),  # 14
        jnp.zeros((sp,), jnp.float32),            # 15  pad to 16 rows
    ], axis=0)

    return w1p, w234, w5p, vec, sp, opad


# ---------------------------------------------------------------------------- wrapper
def linear_block(x, packed):
    """x: [G, n, f] (G independent instances) or [n, f]. Returns same leading shape, f32."""
    w1p, w234, w5p, vec, sp, opad = packed

    squeeze = (x.ndim == 2)
    if squeeze:
        x = x[None]
    x = x.astype(jnp.float32)
    g_count, n, f = x.shape

    # Training-mode BN needs >= 2 rows (PyTorch also rejects n=1 in train mode).
    assert n >= 2, "training-mode BatchNorm1d requires batch size >= 2"

    # VMEM guard: BN couples all rows, so the whole instance stays resident
    # (~several live [n, SP] f32 buffers + resident weights). Keep a conservative cap
    # so we stay inside the default scoped VMEM on all of v5e/v6e/v7x.
    # TODO(synk): restructure BN into a two-pass (stats + apply) kernel tiled over n
    # for batches beyond this cap.
    live_bytes = 8 * n * sp * 4 + 2 * (w1p.size + w234.size + w5p.size) * 2 + vec.size * 4
    assert live_bytes < 12 * 1024 * 1024, (
        f"batch n={n} too large for the whole-batch-resident BN design ({live_bytes} B)")

    kernel = make_linear_block_kernel(n, f, opad)

    flops = int(2 * g_count * n * (f * sp + 3 * sp * sp + sp * opad))
    bytes_accessed = int(x.size * 4 + (w1p.size + w234.size + w5p.size) * 2
                         + vec.size * 4 + g_count * n * opad * 4)
    cost = pl.CostEstimate(flops=flops, transcendentals=int(5 * sp * g_count),
                           bytes_accessed=bytes_accessed)

    out = pl.pallas_call(
        kernel,
        out_shape=jax.ShapeDtypeStruct((g_count, n, opad), jnp.float32),
        grid_spec=pltpu.PrefetchScalarGridSpec(
            num_scalar_prefetch=0,
            grid=(g_count,),
            in_specs=[
                pl.BlockSpec((None, n, f), lambda g: (g, 0, 0)),     # x[g]
                pl.BlockSpec((f, sp), lambda g: (0, 0)),             # w1   (VMEM-resident)
                pl.BlockSpec((3, sp, sp), lambda g: (0, 0, 0)),      # w2/3/4 (VMEM-resident)
                pl.BlockSpec((sp, opad), lambda g: (0, 0)),          # w5   (VMEM-resident)
                pl.BlockSpec((16, sp), lambda g: (0, 0)),            # BN/PReLU params
            ],
            out_specs=pl.BlockSpec((None, n, opad), lambda g: (g, 0, 0)),
        ),
        compiler_params=pltpu.CompilerParams(
            dimension_semantics=("parallel",)),     # megacore-shard grid on v7x
        cost_estimate=cost,
    )(x, w1p, w234, w5p, vec)

    out = out[..., :f]            # drop lane padding of the lin5 output
    if squeeze:
        out = out[0]
    return out


# -------------------------------------------------------------------------- reference
def linear_block_ref(x, alphas, params):
    """Pure-JAX reference for one [n, f] instance: faithful PyTorch semantics
    (all biases kept, two-pass variance), bf16 dot operands to match kernel numerics."""
    def bn(h, g, b):
        mean = jnp.mean(h, axis=0, keepdims=True)
        var = jnp.mean((h - mean) ** 2, axis=0, keepdims=True)
        return (h - mean) * jax.lax.rsqrt(var + BN_EPS) * g + b

    def prelu(h, a):
        return jnp.where(h >= 0.0, h, a * h)

    def dot(h, w, b):
        return jnp.dot(h.astype(jnp.bfloat16), w.astype(jnp.bfloat16),
                       preferred_element_type=jnp.float32) + b

    (g1, be1, w1, b1), (g2, be2, w2, b2), (g3, be3, w3, b3), \
        (g4, be4, w4, b4), (g5, be5, w5, b5) = params

    h = dot(bn(x, g1, be1), w1, b1)
    t = dot(prelu(bn(h, g2, be2), alphas[0]), w2, b2)
    u = dot(prelu(bn(t, g3, be3), alphas[1]), w3, b3)
    h = (u + h) * 0.5
    v = dot(prelu(bn(h, g4, be4), alphas[2]), w4, b4)
    h = (v + h) * 0.5
    return dot(prelu(bn(h, g5, be5), alphas[3]), w5, b5)


# ------------------------------------------------------------------------------- main
if __name__ == "__main__":
    key = jax.random.PRNGKey(0)
    key, kx, kp = jax.random.split(key, 3)

    n_feats = 32
    batch = 8
    n_graphs = 4     # independent invocations fused into one gridded pallas_call

    x = jax.random.normal(kx, (n_graphs, batch, n_feats), jnp.float32)

    alphas, params = init_params(kp, n_feats)
    packed = pack_params(alphas, params, n_feats)   # one-time repack (bf16, lane-dense)

    out = jax.block_until_ready(linear_block(x, packed))

    assert out.shape == (n_graphs, batch, n_feats), out.shape
    assert out.dtype == jnp.float32
    assert bool(jnp.all(jnp.isfinite(out)))

    ref = jnp.stack([linear_block_ref(x[g], alphas, params) for g in range(n_graphs)])
    ref = jax.block_until_ready(ref)
    max_err = float(jnp.max(jnp.abs(out - ref)))
    assert bool(jnp.allclose(out, ref, atol=5e-2, rtol=5e-2)), f"max abs err {max_err}"

    print("KERNEL_OK")
</pallas_src>

<mosaic_0001>
module attributes {stable_mosaic.version = 11 : i64} {
  func.func @kernel(%arg0: i32, %arg1: memref<1x8x32xf32, #tpu.memory_space<vmem>>, %arg2: memref<32x256xbf16, #tpu.memory_space<vmem>>, %arg3: memref<3x256x256xbf16, #tpu.memory_space<vmem>>, %arg4: memref<256x128xbf16, #tpu.memory_space<vmem>>, %arg5: memref<16x256xf32, #tpu.memory_space<vmem>>, %arg6: memref<1x8x128xf32, #tpu.memory_space<vmem>>) attributes {dimension_semantics = [#tpu.dimension_semantics<parallel>], iteration_bounds = array<i64: 4>, scalar_prefetch = 0 : i64, scratch_operands = 0 : i64, tpu.core_type = #tpu.core_type<tc>, window_params = [{transform_indices = @transform_0, window_bounds = array<i64: 1, 8, 32>}, {pipeline_mode = #tpu.pipeline_mode<synchronous>, transform_indices = @transform_1, window_bounds = array<i64: 32, 256>}, {pipeline_mode = #tpu.pipeline_mode<synchronous>, transform_indices = @transform_2, window_bounds = array<i64: 3, 256, 256>}, {pipeline_mode = #tpu.pipeline_mode<synchronous>, transform_indices = @transform_3, window_bounds = array<i64: 256, 128>}, {pipeline_mode = #tpu.pipeline_mode<synchronous>, transform_indices = @transform_4, window_bounds = array<i64: 16, 256>}, {transform_indices = @transform_5, window_bounds = array<i64: 1, 8, 128>}]} {
    %c0 = arith.constant 0 : index
    %c0_0 = arith.constant 0 : index
    %c0_1 = arith.constant 0 : index
    %0 = vector.load %arg1[%c0, %c0_0, %c0_1] : memref<1x8x32xf32, #tpu.memory_space<vmem>>, vector<1x8x32xf32>
    %1 = vector.shape_cast %0 : vector<1x8x32xf32> to vector<8x32xf32>
    %c0_2 = arith.constant 0 : index
    %c0_3 = arith.constant 0 : index
    %2 = vector.load %arg5[%c0_2, %c0_3] : memref<16x256xf32, #tpu.memory_space<vmem>>, vector<16x256xf32>
    %3 = vector.extract_strided_slice %2 {offsets = [0, 0], sizes = [1, 32], strides = [1, 1]} : vector<16x256xf32> to vector<1x32xf32>
    %4 = vector.extract_strided_slice %2 {offsets = [1, 0], sizes = [1, 32], strides = [1, 1]} : vector<16x256xf32> to vector<1x32xf32>
    %5 = vector.extract_strided_slice %2 {offsets = [2, 0], sizes = [1, 256], strides = [1, 1]} : vector<16x256xf32> to vector<1x256xf32>
    %6 = vector.extract_strided_slice %2 {offsets = [3, 0], sizes = [1, 256], strides = [1, 1]} : vector<16x256xf32> to vector<1x256xf32>
    %7 = vector.extract_strided_slice %2 {offsets = [4, 0], sizes = [1, 256], strides = [1, 1]} : vector<16x256xf32> to vector<1x256xf32>
    %8 = vector.extract_strided_slice %2 {offsets = [5, 0], sizes = [1, 256], strides = [1, 1]} : vector<16x256xf32> to vector<1x256xf32>
    %9 = vector.extract_strided_slice %2 {offsets = [6, 0], sizes = [1, 256], strides = [1, 1]} : vector<16x256xf32> to vector<1x256xf32>
    %10 = vector.extract_strided_slice %2 {offsets = [7, 0], sizes = [1, 256], strides = [1, 1]} : vector<16x256xf32> to vector<1x256xf32>
    %11 = vector.extract_strided_slice %2 {offsets = [8, 0], sizes = [1, 256], strides = [1, 1]} : vector<16x256xf32> to vector<1x256xf32>
    %12 = vector.extract_strided_slice %2 {offsets = [9, 0], sizes = [1, 256], strides = [1, 1]} : vector<16x256xf32> to vector<1x256xf32>
    %13 = vector.extract_strided_slice %2 {offsets = [10, 0], sizes = [1, 128], strides = [1, 1]} : vector<16x256xf32> to vector<1x128xf32>
    %14 = vector.extract_strided_slice %2 {offsets = [11, 0], sizes = [1, 256], strides = [1, 1]} : vector<16x256xf32> to vector<1x256xf32>
    %15 = vector.extract_strided_slice %2 {offsets = [12, 0], sizes = [1, 256], strides = [1, 1]} : vector<16x256xf32> to vector<1x256xf32>
    %16 = vector.extract_strided_slice %2 {offsets = [13, 0], sizes = [1, 256], strides = [1, 1]} : vector<16x256xf32> to vector<1x256xf32>
    %17 = vector.extract_strided_slice %2 {offsets = [14, 0], sizes = [1, 256], strides = [1, 1]} : vector<16x256xf32> to vector<1x256xf32>
    %cst = arith.constant dense<0.000000e+00> : vector<32xf32>
    %18 = vector.multi_reduction <add>, %1, %cst [0] : vector<8x32xf32> to vector<32xf32>
    %19 = vector.shape_cast %18 : vector<32xf32> to vector<1x32xf32>
    %20 = arith.mulf %1, %1 : vector<8x32xf32>
    %cst_4 = arith.constant dense<0.000000e+00> : vector<32xf32>
    %21 = vector.multi_reduction <add>, %20, %cst_4 [0] : vector<8x32xf32> to vector<32xf32>
    %22 = vector.shape_cast %21 : vector<32xf32> to vector<1x32xf32>
    %cst_5 = arith.constant 1.250000e-01 : f32
    %23 = vector.broadcast %cst_5 : f32 to vector<1x32xf32>
    %24 = arith.mulf %19, %23 : vector<1x32xf32>
    %cst_6 = arith.constant 1.250000e-01 : f32
    %25 = vector.broadcast %cst_6 : f32 to vector<1x32xf32>
    %26 = arith.mulf %22, %25 : vector<1x32xf32>
    %27 = arith.mulf %24, %24 : vector<1x32xf32>
    %28 = arith.subf %26, %27 : vector<1x32xf32>
    %cst_7 = arith.constant 0.000000e+00 : f32
    %29 = vector.broadcast %cst_7 : f32 to vector<1x32xf32>
    %30 = arith.maximumf %28, %29 : vector<1x32xf32>
    %cst_8 = arith.constant 9.99999974E-6 : f32
    %31 = vector.broadcast %cst_8 : f32 to vector<1x32xf32>
    %32 = arith.addf %30, %31 : vector<1x32xf32>
    %33 = math.rsqrt %32 : vector<1x32xf32>
    %34 = arith.mulf %3, %33 : vector<1x32xf32>
    %35 = arith.mulf %24, %34 : vector<1x32xf32>
    %36 = arith.subf %4, %35 : vector<1x32xf32>
    %37 = vector.broadcast %34 : vector<1x32xf32> to vector<8x32xf32>
    %38 = arith.mulf %1, %37 : vector<8x32xf32>
    %39 = vector.broadcast %36 : vector<1x32xf32> to vector<8x32xf32>
    %40 = arith.addf %38, %39 : vector<8x32xf32>
    %c0_9 = arith.constant 0 : index
    %c0_10 = arith.constant 0 : index
    %41 = vector.load %arg2[%c0_9, %c0_10] : memref<32x256xbf16, #tpu.memory_space<vmem>>, vector<32x256xbf16>
    %42 = arith.truncf %40 : vector<8x32xf32> to vector<8x32xbf16>
    %cst_11 = arith.constant dense<0.000000e+00> : vector<8x256xf32>
    %43 = tpu.matmul %42, %41, %cst_11 {dimension_numbers = #tpu.dot_dimension_numbers<[1], [0], [0], [1], [0, 0, 1, 1], [], []>} : vector<8x32xbf16>, vector<32x256xbf16>, vector<8x256xf32> -> vector<8x256xf32>
    %cst_12 = arith.constant dense<0.000000e+00> : vector<256xf32>
    %44 = vector.multi_reduction <add>, %43, %cst_12 [0] : vector<8x256xf32> to vector<256xf32>
    %45 = vector.shape_cast %44 : vector<256xf32> to vector<1x256xf32>
    %46 = arith.mulf %43, %43 : vector<8x256xf32>
    %cst_13 = arith.constant dense<0.000000e+00> : vector<256xf32>
    %47 = vector.multi_reduction <add>, %46, %cst_13 [0] : vector<8x256xf32> to vector<256xf32>
    %48 = vector.shape_cast %47 : vector<256xf32> to vector<1x256xf32>
    %cst_14 = arith.constant 1.250000e-01 : f32
    %49 = vector.broadcast %cst_14 : f32 to vector<1x256xf32>
    %50 = arith.mulf %45, %49 : vector<1x256xf32>
    %cst_15 = arith.constant 1.250000e-01 : f32
    %51 = vector.broadcast %cst_15 : f32 to vector<1x256xf32>
    %52 = arith.mulf %48, %51 : vector<1x256xf32>
    %53 = arith.mulf %50, %50 : vector<1x256xf32>
    %54 = arith.subf %52, %53 : vector<1x256xf32>
    %cst_16 = arith.constant 0.000000e+00 : f32
    %55 = vector.broadcast %cst_16 : f32 to vector<1x256xf32>
    %56 = arith.maximumf %54, %55 : vector<1x256xf32>
    %cst_17 = arith.constant 9.99999974E-6 : f32
    %57 = vector.broadcast %cst_17 : f32 to vector<1x256xf32>
    %58 = arith.addf %56, %57 : vector<1x256xf32>
    %59 = math.rsqrt %58 : vector<1x256xf32>
    %60 = arith.mulf %5, %59 : vector<1x256xf32>
    %61 = arith.mulf %50, %60 : vector<1x256xf32>
    %62 = arith.subf %6, %61 : vector<1x256xf32>
    %63 = vector.broadcast %60 : vector<1x256xf32> to vector<8x256xf32>
    %64 = arith.mulf %43, %63 : vector<8x256xf32>
    %65 = vector.broadcast %62 : vector<1x256xf32> to vector<8x256xf32>
    %66 = arith.addf %64, %65 : vector<8x256xf32>
    %cst_18 = arith.constant 0.000000e+00 : f32
    %67 = vector.broadcast %cst_18 : f32 to vector<8x256xf32>
    %68 = arith.cmpf oge, %66, %67 : vector<8x256xf32>
    %69 = vector.broadcast %14 : vector<1x256xf32> to vector<8x256xf32>
    %70 = arith.mulf %69, %66 : vector<8x256xf32>
    %71 = arith.select %68, %66, %70 : vector<8x256xi1>, vector<8x256xf32>
    %c0_19 = arith.constant 0 : index
    %c0_20 = arith.constant 0 : index
    %c0_21 = arith.constant 0 : index
    %72 = vector.load %arg3[%c0_19, %c0_20, %c0_21] : memref<3x256x256xbf16, #tpu.memory_space<vmem>>, vector<1x256x256xbf16>
    %73 = vector.shape_cast %72 : vector<1x256x256xbf16> to vector<256x256xbf16>
    %74 = arith.truncf %71 : vector<8x256xf32> to vector<8x256xbf16>
    %cst_22 = arith.constant dense<0.000000e+00> : vector<8x256xf32>
    %75 = tpu.matmul %74, %73, %cst_22 {dimension_numbers = #tpu.dot_dimension_numbers<[1], [0], [0], [1], [0, 0, 1, 1], [], []>} : vector<8x256xbf16>, vector<256x256xbf16>, vector<8x256xf32> -> vector<8x256xf32>
    %cst_23 = arith.constant dense<0.000000e+00> : vector<256xf32>
    %76 = vector.multi_reduction <add>, %75, %cst_23 [0] : vector<8x256xf32> to vector<256xf32>
    %77 = vector.shape_cast %76 : vector<256xf32> to vector<1x256xf32>
    %78 = arith.mulf %75, %75 : vector<8x256xf32>
    %cst_24 = arith.constant dense<0.000000e+00> : vector<256xf32>
    %79 = vector.multi_reduction <add>, %78, %cst_24 [0] : vector<8x256xf32> to vector<256xf32>
    %80 = vector.shape_cast %79 : vector<256xf32> to vector<1x256xf32>
    %cst_25 = arith.constant 1.250000e-01 : f32
    %81 = vector.broadcast %cst_25 : f32 to vector<1x256xf32>
    %82 = arith.mulf %77, %81 : vector<1x256xf32>
    %cst_26 = arith.constant 1.250000e-01 : f32
    %83 = vector.broadcast %cst_26 : f32 to vector<1x256xf32>
    %84 = arith.mulf %80, %83 : vector<1x256xf32>
    %85 = arith.mulf %82, %82 : vector<1x256xf32>
    %86 = arith.subf %84, %85 : vector<1x256xf32>
    %cst_27 = arith.constant 0.000000e+00 : f32
    %87 = vector.broadcast %cst_27 : f32 to vector<1x256xf32>
    %88 = arith.maximumf %86, %87 : vector<1x256xf32>
    %cst_28 = arith.constant 9.99999974E-6 : f32
    %89 = vector.broadcast %cst_28 : f32 to vector<1x256xf32>
    %90 = arith.addf %88, %89 : vector<1x256xf32>
    %91 = math.rsqrt %90 : vector<1x256xf32>
    %92 = arith.mulf %7, %91 : vector<1x256xf32>
    %93 = arith.mulf %82, %92 : vector<1x256xf32>
    %94 = arith.subf %8, %93 : vector<1x256xf32>
    %95 = vector.broadcast %92 : vector<1x256xf32> to vector<8x256xf32>
    %96 = arith.mulf %75, %95 : vector<8x256xf32>
    %97 = vector.broadcast %94 : vector<1x256xf32> to vector<8x256xf32>
    %98 = arith.addf %96, %97 : vector<8x256xf32>
    %cst_29 = arith.constant 0.000000e+00 : f32
    %99 = vector.broadcast %cst_29 : f32 to vector<8x256xf32>
    %100 = arith.cmpf oge, %98, %99 : vector<8x256xf32>
    %101 = vector.broadcast %15 : vector<1x256xf32> to vector<8x256xf32>
    %102 = arith.mulf %101, %98 : vector<8x256xf32>
    %103 = arith.select %100, %98, %102 : vector<8x256xi1>, vector<8x256xf32>
    %c1 = arith.constant 1 : index
    %c0_30 = arith.constant 0 : index
    %c0_31 = arith.constant 0 : index
    %104 = vector.load %arg3[%c1, %c0_30, %c0_31] : memref<3x256x256xbf16, #tpu.memory_space<vmem>>, vector<1x256x256xbf16>
    %105 = vector.shape_cast %104 : vector<1x256x256xbf16> to vector<256x256xbf16>
    %106 = arith.truncf %103 : vector<8x256xf32> to vector<8x256xbf16>
    %cst_32 = arith.constant dense<0.000000e+00> : vector<8x256xf32>
    %107 = tpu.matmul %106, %105, %cst_32 {dimension_numbers = #tpu.dot_dimension_numbers<[1], [0], [0], [1], [0, 0, 1, 1], [], []>} : vector<8x256xbf16>, vector<256x256xbf16>, vector<8x256xf32> -> vector<8x256xf32>
    %108 = arith.addf %107, %43 : vector<8x256xf32>
    %cst_33 = arith.constant 5.000000e-01 : f32
    %109 = vector.broadcast %cst_33 : f32 to vector<8x256xf32>
    %110 = arith.mulf %108, %109 : vector<8x256xf32>
    %cst_34 = arith.constant dense<0.000000e+00> : vector<256xf32>
    %111 = vector.multi_reduction <add>, %110, %cst_34 [0] : vector<8x256xf32> to vector<256xf32>
    %112 = vector.shape_cast %111 : vector<256xf32> to vector<1x256xf32>
    %113 = arith.mulf %110, %110 : vector<8x256xf32>
    %cst_35 = arith.constant dense<0.000000e+00> : vector<256xf32>
    %114 = vector.multi_reduction <add>, %113, %cst_35 [0] : vector<8x256xf32> to vector<256xf32>
    %115 = vector.shape_cast %114 : vector<256xf32> to vector<1x256xf32>
    %cst_36 = arith.constant 1.250000e-01 : f32
    %116 = vector.broadcast %cst_36 : f32 to vector<1x256xf32>
    %117 = arith.mulf %112, %116 : vector<1x256xf32>
    %cst_37 = arith.constant 1.250000e-01 : f32
    %118 = vector.broadcast %cst_37 : f32 to vector<1x256xf32>
    %119 = arith.mulf %115, %118 : vector<1x256xf32>
    %120 = arith.mulf %117, %117 : vector<1x256xf32>
    %121 = arith.subf %119, %120 : vector<1x256xf32>
    %cst_38 = arith.constant 0.000000e+00 : f32
    %122 = vector.broadcast %cst_38 : f32 to vector<1x256xf32>
    %123 = arith.maximumf %121, %122 : vector<1x256xf32>
    %cst_39 = arith.constant 9.99999974E-6 : f32
    %124 = vector.broadcast %cst_39 : f32 to vector<1x256xf32>
    %125 = arith.addf %123, %124 : vector<1x256xf32>
    %126 = math.rsqrt %125 : vector<1x256xf32>
    %127 = arith.mulf %9, %126 : vector<1x256xf32>
    %128 = arith.mulf %117, %127 : vector<1x256xf32>
    %129 = arith.subf %10, %128 : vector<1x256xf32>
    %130 = vector.broadcast %127 : vector<1x256xf32> to vector<8x256xf32>
    %131 = arith.mulf %110, %130 : vector<8x256xf32>
    %132 = vector.broadcast %129 : vector<1x256xf32> to vector<8x256xf32>
    %133 = arith.addf %131, %132 : vector<8x256xf32>
    %cst_40 = arith.constant 0.000000e+00 : f32
    %134 = vector.broadcast %cst_40 : f32 to vector<8x256xf32>
    %135 = arith.cmpf oge, %133, %134 : vector<8x256xf32>
    %136 = vector.broadcast %16 : vector<1x256xf32> to vector<8x256xf32>
    %137 = arith.mulf %136, %133 : vector<8x256xf32>
    %138 = arith.select %135, %133, %137 : vector<8x256xi1>, vector<8x256xf32>
    %c2 = arith.constant 2 : index
    %c0_41 = arith.constant 0 : index
    %c0_42 = arith.constant 0 : index
    %139 = vector.load %arg3[%c2, %c0_41, %c0_42] : memref<3x256x256xbf16, #tpu.memory_space<vmem>>, vector<1x256x256xbf16>
    %140 = vector.shape_cast %139 : vector<1x256x256xbf16> to vector<256x256xbf16>
    %141 = arith.truncf %138 : vector<8x256xf32> to vector<8x256xbf16>
    %cst_43 = arith.constant dense<0.000000e+00> : vector<8x256xf32>
    %142 = tpu.matmul %141, %140, %cst_43 {dimension_numbers = #tpu.dot_dimension_numbers<[1], [0], [0], [1], [0, 0, 1, 1], [], []>} : vector<8x256xbf16>, vector<256x256xbf16>, vector<8x256xf32> -> vector<8x256xf32>
    %143 = arith.addf %142, %110 : vector<8x256xf32>
    %cst_44 = arith.constant 5.000000e-01 : f32
    %144 = vector.broadcast %cst_44 : f32 to vector<8x256xf32>
    %145 = arith.mulf %143, %144 : vector<8x256xf32>
    %cst_45 = arith.constant dense<0.000000e+00> : vector<256xf32>
    %146 = vector.multi_reduction <add>, %145, %cst_45 [0] : vector<8x256xf32> to vector<256xf32>
    %147 = vector.shape_cast %146 : vector<256xf32> to vector<1x256xf32>
    %148 = arith.mulf %145, %145 : vector<8x256xf32>
    %cst_46 = arith.constant dense<0.000000e+00> : vector<256xf32>
    %149 = vector.multi_reduction <add>, %148, %cst_46 [0] : vector<8x256xf32> to vector<256xf32>
    %150 = vector.shape_cast %149 : vector<256xf32> to vector<1x256xf32>
    %cst_47 = arith.constant 1.250000e-01 : f32
    %151 = vector.broadcast %cst_47 : f32 to vector<1x256xf32>
    %152 = arith.mulf %147, %151 : vector<1x256xf32>
    %cst_48 = arith.constant 1.250000e-01 : f32
    %153 = vector.broadcast %cst_48 : f32 to vector<1x256xf32>
    %154 = arith.mulf %150, %153 : vector<1x256xf32>
    %155 = arith.mulf %152, %152 : vector<1x256xf32>
    %156 = arith.subf %154, %155 : vector<1x256xf32>
    %cst_49 = arith.constant 0.000000e+00 : f32
    %157 = vector.broadcast %cst_49 : f32 to vector<1x256xf32>
    %158 = arith.maximumf %156, %157 : vector<1x256xf32>
    %cst_50 = arith.constant 9.99999974E-6 : f32
    %159 = vector.broadcast %cst_50 : f32 to vector<1x256xf32>
    %160 = arith.addf %158, %159 : vector<1x256xf32>
    %161 = math.rsqrt %160 : vector<1x256xf32>
    %162 = arith.mulf %11, %161 : vector<1x256xf32>
    %163 = arith.mulf %152, %162 : vector<1x256xf32>
    %164 = arith.subf %12, %163 : vector<1x256xf32>
    %165 = vector.broadcast %162 : vector<1x256xf32> to vector<8x256xf32>
    %166 = arith.mulf %145, %165 : vector<8x256xf32>
    %167 = vector.broadcast %164 : vector<1x256xf32> to vector<8x256xf32>
    %168 = arith.addf %166, %167 : vector<8x256xf32>
    %cst_51 = arith.constant 0.000000e+00 : f32
    %169 = vector.broadcast %cst_51 : f32 to vector<8x256xf32>
    %170 = arith.cmpf oge, %168, %169 : vector<8x256xf32>
    %171 = vector.broadcast %17 : vector<1x256xf32> to vector<8x256xf32>
    %172 = arith.mulf %171, %168 : vector<8x256xf32>
    %173 = arith.select %170, %168, %172 : vector<8x256xi1>, vector<8x256xf32>
    %c0_52 = arith.constant 0 : index
    %c0_53 = arith.constant 0 : index
    %174 = vector.load %arg4[%c0_52, %c0_53] : memref<256x128xbf16, #tpu.memory_space<vmem>>, vector<256x128xbf16>
    %175 = arith.truncf %173 : vector<8x256xf32> to vector<8x256xbf16>
    %cst_54 = arith.constant dense<0.000000e+00> : vector<8x128xf32>
    %176 = tpu.matmul %175, %174, %cst_54 {dimension_numbers = #tpu.dot_dimension_numbers<[1], [0], [0], [1], [0, 0, 1, 1], [], []>} : vector<8x256xbf16>, vector<256x128xbf16>, vector<8x128xf32> -> vector<8x128xf32>
    %177 = vector.broadcast %13 : vector<1x128xf32> to vector<8x128xf32>
    %178 = arith.addf %176, %177 : vector<8x128xf32>
    %c0_55 = arith.constant 0 : index
    %c0_56 = arith.constant 0 : index
    %c0_57 = arith.constant 0 : index
    %179 = vector.load %arg6[%c0_55, %c0_56, %c0_57] : memref<1x8x128xf32, #tpu.memory_space<vmem>>, vector<1x8x128xf32>
    %180 = vector.shape_cast %179 : vector<1x8x128xf32> to vector<8x128xf32>
    %181 = vector.shape_cast %178 : vector<8x128xf32> to vector<1x8x128xf32>
    tpu.vector_store %arg6[%c0_55, %c0_56, %c0_57], %181 {strides = array<i32>} : memref<1x8x128xf32, #tpu.memory_space<vmem>>, vector<1x8x128xf32>,
    return
  }
  func.func @transform_0(%arg0: i32) -> (i32, i32, i32) {
    %c0_i32 = arith.constant 0 : i32
    %c0_i32_0 = arith.constant 0 : i32
    %c0_i32_1 = arith.constant 0 : i32
    return %arg0, %c0_i32, %c0_i32_0 : i32, i32, i32
  }
  func.func @transform_1(%arg0: i32) -> (i32, i32) {
    %c0_i32 = arith.constant 0 : i32
    %c0_i32_0 = arith.constant 0 : i32
    %c0_i32_1 = arith.constant 0 : i32
    return %c0_i32, %c0_i32_0 : i32, i32
  }
  func.func @transform_2(%arg0: i32) -> (i32, i32, i32) {
    %c0_i32 = arith.constant 0 : i32
    %c0_i32_0 = arith.constant 0 : i32
    %c0_i32_1 = arith.constant 0 : i32
    %c0_i32_2 = arith.constant 0 : i32
    return %c0_i32, %c0_i32_0, %c0_i32_1 : i32, i32, i32
  }
  func.func @transform_3(%arg0: i32) -> (i32, i32) {
    %c0_i32 = arith.constant 0 : i32
    %c0_i32_0 = arith.constant 0 : i32
    %c0_i32_1 = arith.constant 0 : i32
    return %c0_i32, %c0_i32_0 : i32, i32
  }
  func.func @transform_4(%arg0: i32) -> (i32, i32) {
    %c0_i32 = arith.constant 0 : i32
    %c0_i32_0 = arith.constant 0 : i32
    %c0_i32_1 = arith.constant 0 : i32
    return %c0_i32, %c0_i32_0 : i32, i32
  }
  func.func @transform_5(%arg0: i32) -> (i32, i32, i32) {
    %c0_i32 = arith.constant 0 : i32
    %c0_i32_0 = arith.constant 0 : i32
    %c0_i32_1 = arith.constant 0 : i32
    return %arg0, %c0_i32, %c0_i32_0 : i32, i32, i32
  }
}

</mosaic_0001>

<bundles_post_ra>
// kernel: tpu_custom_call.1
= control target key start
LH: loop header
LB: loop body
LE: loop exit
PB: predicated region body
PF: predicated region fallthrough
CT: control target
= control target key end

     0   :  { %10 = vsyncpa [#allocation3], 0  ;;  %s3041_s0 = inlined_call_operand.hbm [shape: f32[4,8,32], index: 0, kind: input, shape index: {}]   ;;  %s3042_s1 = inlined_call_operand.hbm [shape: bf16[32,256], index: 1, kind: input, shape index: {}]   ;;  %s3043_s2 = inlined_call_operand.hbm [shape: bf16[3,256,256], index: 2, kind: input, shape index: {}]   ;;  %s3044_s3 = inlined_call_operand.hbm [shape: bf16[256,128], index: 3, kind: input, shape index: {}]   ;;  %s3045_s4 = inlined_call_operand.hbm [shape: f32[16,256], index: 4, kind: input, shape index: {}]   ;;  %s3046_s5 = inlined_call_operand.hbm [shape: f32[4,8,128], index: 5, kind: output, shape index: {}]  }
   0x1   :  { %12 = vsyncpa [#allocation3 + $0x1], 0 }
   0x2   :  { %13 = vsyncpa [#allocation6], 0 }
   0x3   :  { %14 = vsyncpa [#allocation9], 0 }
   0x4   :  { %15 = vsyncpa [#allocation4], 0 }
   0x5   :  { %17 = vsyncpa [#allocation4 + $0x1], 0  ;;  %s2762_s18 = smov 0   ;;  %s2764_s19 = smov 0  }
   0x6   :  { %s2766_s20 = smov 0   ;;  %s2768_s21 = smov 0  }
   0x7 LB: > { %s175_s24 = sshll.u32 %s3042_s1, 4  ;;  %s2786_s25 = sadd.s32 4294967295, %s2720_s21   ;;  %s2720_s21 = sphi %s2768_s21, %s3057_s21   ;;  %s2716_s20 = sphi %s2766_s20, %s3056_s20   ;;  %s2712_s19 = sphi %s2764_s19, %s3055_s19   ;;  %s2708_s18 = sphi %s2762_s18, %s3054_s18   ;;  %s176_s24 = int_to_ptr.hbm [resolvable:$true] %s175_s24 }
   0x8   : > { %p1781_p0 = scmp.ge.s32.totalorder %s2720_s21, 1  ;;  %p44_p1 = scmp.eq.s32.totalorder %s2786_s25, 0 }
   0x9   : > { %p164_p2 = scmp.lt.s32.totalorder %s2720_s21, 5  ;;  %s2722_s27 = smov [#allocation5]  }
   0xa   : > { %s177_s28 = sshll.u32 %s2722_s27, 4  ;;  %s203_s6 = sshll.u32 %s3044_s3, 4  ;;  %s178_s28 = int_to_ptr.vmem [resolvable:$true] %s177_s28  ;;  %s204_s6 = int_to_ptr.hbm [resolvable:$true] %s203_s6 }
   0xb   : > { %p2791_p3 = pnand %p1781_p0, %p164_p2  ;;  %s2723_s8 = smov [#allocation8]  }
   0xc   : > { %s205_s9 = sshll.u32 %s2723_s8, 4  ;;  %s2724_s10 = smov 128   ;;  %s206_s9 = int_to_ptr.vmem [resolvable:$true] %s205_s9 }
   0xd   : > { %p2402_p4 = pneg %p2791_p3  ;;  %s2725_s11 = smov 8  }
   0xe   : > { %s2726_s12 = smov 64   ;;  %s2727_s13 = smov 4  }
   0xf   : > { %p2802_p5 = pnand %p2402_p4, %p44_p1  ;;  %s189_s16 = sshll.u32 %s3043_s2, 4  ;;  %s190_s16 = int_to_ptr.hbm [resolvable:$true] %s189_s16 }
  0x10   : > { %s2728_s17 = smov [#allocation7]   ;;  %s217_s27 = sshll.u32 %s3045_s4, 4  ;;  %s218_s27 = int_to_ptr.hbm [resolvable:$true] %s217_s27 }
  0x11   : > { %2405 = dma.hbm_to_vmem [thread:$0]  (!%p2802_p5), %s176_s24, 512, %s178_s28, [#allocation6], %s2724_s10, %s2724_s10, %s2725_s11  }
  0x12   : > { %2411 = dma.hbm_to_vmem [thread:$0]  (!%p2802_p5), %s204_s6, 2048, %s206_s9, [#allocation9], %s2726_s12, %s2726_s12, %s2727_s13  }
  0x13   : > { %s191_s22 = sshll.u32 %s2728_s17, 4  ;;  %s2729_s28 = smov [#allocation10]   ;;  %s192_s22 = int_to_ptr.vmem [resolvable:$true] %s191_s22 }
  0x14   : > { %2408 = dma.hbm_to_vmem [thread:$0]  (!%p2802_p5), %s190_s16, 12288, %s192_s22, [#allocation6], %s2724_s10, %s2724_s10, %s2725_s11  }
  0x15   : > { %s219_s29 = sshll.u32 %s2729_s28, 4  ;;  %s2730_s30 = smov 256   ;;  %s220_s29 = int_to_ptr.vmem [resolvable:$true] %s219_s29 }
  0x16   : > { %s2731_s6 = smov 16   ;;  %s1780_s8 = sadd.s32 4294967294, %s2720_s21  }
  0x17   : > { %2414 = dma.hbm_to_vmem [thread:$0]  (!%p2802_p5), %s218_s27, 512, %s220_s29, [#allocation9], %s2730_s30, %s2730_s30, %s2731_s6  }
  0x18   : > { %s2822_s9 = sadd.s32 1, %s2720_s21   ;;  %s30_s10 = sadd.s32 1, %s2716_s20 }
  0x19   : > { %s27_s12 = ssub.s32 %s2720_s21, %s2822_s9  ;;  %p37_p7 = scmp.ne.s32.totalorder %s2716_s20, %s2712_s19 }
  0x1a   : > { %p28_p6 = scmp.eq.s32.totalorder %s27_s12, 0  ;;  %p38_p8 = scmp.eq.s32.totalorder %s2720_s21, 0 }
  0x1b   : > { %p43_p9 = scmp.ne.s32.totalorder %s2712_s19, %s2708_s18  ;;  %p151_p12 = scmp.eq.s32.totalorder %s2786_s25, 3 }
  0x1c   : > { %s2833_s11 = scalar_select %p28_p6, %s2716_s20, %s30_s10  }
  0x1d   : > { %p2835_p10 = por %p38_p8, %p37_p7  ;;  %p2841_p11 = por %p44_p1, %p43_p9 }
  0x1e   : > { %p157_p13 = scmp.eq.s32.totalorder %s1780_s8, 3  ;;  %p2427_p0 = scmp.lt.s32.totalorder %s2720_s21, 4 }
  0x1f   : > { %s233_s14 = sand.u32 1, %s2716_s20   ;;  %p2848_p2 = por %p151_p12, %p37_p7 }
  0x20   : > { %p2852_p4 = por %p157_p13, %p43_p9  ;;  %s1787_s17 = sshll.u32 %s233_s14, 3 }
  0x21   : > { %s1788_s22 = sshll.u32 %s2720_s21, 3  ;;  %s237_s28 = scalar_lea.vmem [#allocation2], %s1787_s17 }
  0x22   : > { %s241_s27 = scalar_lea.hbm %s3041_s0, %s1788_s22  ;;  %s245_s29 = sshll.u32 %s237_s28, 4  ;;  %s246_s29 = int_to_ptr.vmem [resolvable:$true] %s245_s29 }
  0x23   : > { %s243_s30 = sshll.u32 %s241_s27, 4  ;;  %p2862_p5 = pnand %p2427_p0, %p2835_p10  ;;  %s244_s30 = int_to_ptr.hbm [resolvable:$true] %s243_s30 }
  0x24   : > { %s234_s8 = scalar_lea.sflag [#allocation3], %s233_s14  ;;  %s2616_s12 = sshra.s32 %s244_s30, 4  ;;  %s2617_s12 = int_to_ptr.hbm [resolvable:$true] %s2616_s12 }
  0x25   : > { %s2618_s10 = scalar_lea.hbm %s2617_s12, 8  ;;  %p2620_p7 = pneg %p2862_p5 }
  0x26   : > { %p2619_p6 = scmp.ne.s32.totalorder %s2617_s12, %s2618_s10  ;;  %s2623_s23 = scalar_lea.hbm %s3041_s0, 32 }
  0x27   : > { %p2624_p10 = scmp.lt.s32.totalorder %s2617_s12, %s3041_s0  ;;  %p2625_p12 = scmp.lt.s32.totalorder %s2623_s23, %s2618_s10 }
  0x28   : > { %p2621_p8 = pnand %p2620_p7, %p2619_p6 }
  0x29   : > { %p2626_p13 = por %p2625_p12, %p2624_p10 }
  0x2a   : > { %p2622_p9 = pneg %p2621_p8 }
  0x2c   : > { %p2627_p0 = pnand %p2626_p13, %p2622_p9 }
  0x2e   : > { %2630 = shalt.err (!%p2627_p0)
}
  0x2f   : > { %2418 = dma.hbm_to_vmem [thread:$0]  (!%p2862_p5), %s244_s30, 128, %s246_s29, %s234_s8  }
  0x30   : > { %254 = sbr.rel (%p2791_p3) target bundleno = 1022 (0x3fe), region = 40  ;;  %s2879_s14 = sand.u32 (!%p2791_p3), 1, %s2712_s19  }
  0x31   : > { %s1790_s27 = sshll.u32 (!%p2791_p3), %s2879_s14, 3  ;;  %s257_s28 = scalar_lea.sflag (!%p2791_p3), [#allocation3], %s2879_s14 }
  0x32   : > { %s260_s12 = scalar_lea.vmem (!%p2791_p3), [#allocation2], %s1790_s27 }
  0x35   : > { %2691 = dma.done.wait (%p2841_p11), %s257_s28, 128  }
  0x36   : > { %2693 = vsyncadd (%p2841_p11), %s257_s28, 4294967168 }
  0x37   : > { %2695 = dma.done.wait (%p44_p1), [#allocation6], 12800  }
  0x38   : > { %2697 = vsyncadd (%p44_p1), [#allocation6], 4294954496 }
  0x39   : > { %2699 = dma.done.wait (%p44_p1), [#allocation9], 2560  }
  0x3a   : > { %2701 = vsyncadd (%p44_p1), [#allocation9], 4294964736  ;;  %vm314_vm0 = vcmask 261120   ;;  %v1806_v0 = vld [vmem:[#allocation5 + $0x10] sm:$0xf]  ;;  %v2899_v39 = vld [vmem:[#allocation10] sm:$0xff] }
  0x3b   : > { %v2269_v1 = vld [vmem:[#allocation5 + $0x14] sm:$0xf0]  ;;  %v2268_v2 = vld [vmem:[#allocation5 + $0x14] sm:$0xf]  ;;  %v1808_v4 = vld [vmem:[#allocation5 + $0x18] sm:$0xf0] }
  0x3c   : > { %v1807_v3 = vor.u32 %v2269_v1, %v1806_v0  ;;  %v1798_v5 = vld [vmem:[#allocation5] sm:$0xf]  ;;  %v2267_v6 = vld [vmem:[#allocation5 + $0x4] sm:$0xf0]  ;;  %v1811_v7 = vor.u32 %v2268_v2, %v1808_v4  ;;  %v2266_v8 = vld [vmem:[#allocation5 + $0x4] sm:$0xf] }
  0x3d   : > { %v1800_v9 = vld [vmem:[#allocation5 + $0x8] sm:$0xf0]  ;;  %v309_v10 = vld [vmem:[%s260_s12] sm:$0xff]  ;;  %v1799_v11 = vor.u32 %v2267_v6, %v1798_v5  ;;  %v1864_v63 = vld [vmem:[#allocation7 + $0x60] sm:$0xf]  ;;  %s2263_s26 = sshll.u32 %s2786_s25, 3 }
  0x3e   : > { %390 = vmatpush.bf16.msra.mxu0 %v1807_v3  ;;  %v315_v12 = vsel %vm314_vm0, %v309_v10, 0.0  ;;  %v322_v13 = vmul.f32 %v309_v10, %v309_v10  ;;  %403 = vmatpush.bf16.msra.mxu1 %v1811_v7  ;;  %v1803_v14 = vor.u32 %v2266_v8, %v1800_v9  ;;  %v1872_v51 = vld [vmem:[#allocation7 + $0x70] sm:$0xf]  ;;  %v2285_v52 = vld [vmem:[#allocation7 + $0x74] sm:$0xf0]  ;;  %s1667_s30 = scalar_lea.hbm %s3046_s5, %s2263_s26  ;;  %s307_s6 = scalar_lea.vmem [#allocation11], %s1790_s27 }
  0x3f   : > { %v316_v15 = vrot.slane %v315_v12, 4  ;;  %v1936_v53 = vld [vmem:[#allocation7 + $0xf0] sm:$0xf]  ;;  %v1873_v54 = vor.u32 %v2285_v52, %v1872_v51  ;;  %v2301_v55 = vld [vmem:[#allocation7 + $0xf4] sm:$0xf0]  ;;  %s1669_s8 = sshll.u32 %s307_s6, 4  ;;  %s1670_s8 = int_to_ptr.vmem [resolvable:$true] %s1669_s8 }
  0x40   : > { %v323_v16 = vsel %vm314_vm0, %v322_v13, 0.0  ;;  %v2284_v56 = vld [vmem:[#allocation7 + $0x74] sm:$0xf]  ;;  %v1874_v57 = vld [vmem:[#allocation7 + $0x78] sm:$0xf0]  ;;  %v1937_v58 = vor.u32 %v2301_v55, %v1936_v53  ;;  %s1671_s10 = sshll.u32 %s1667_s30, 4  ;;  %s1672_s10 = int_to_ptr.hbm [resolvable:$true] %s1671_s10 }
  0x41   : > { %v317_v17 = vadd.f32 %v316_v15, %v315_v12  ;;  %v324_v18 = vrot.slane %v323_v16, 4  ;;  %v1877_v59 = vor.u32 %v2284_v56, %v1874_v57  ;;  %v2300_v60 = vld [vmem:[#allocation7 + $0xf4] sm:$0xf]  ;;  %v1938_v61 = vld [vmem:[#allocation7 + $0xf8] sm:$0xf0]  ;;  %690 = vmatpush.bf16.msra.mxu2 %v1873_v54  ;;  %s1657_s17 = scalar_lea.sflag [#allocation4], %s2879_s14 }
  0x42   : > { %391 = vmatpush.bf16.msra.mxu0 %v1799_v11  ;;  %404 = vmatpush.bf16.msra.mxu1 %v1803_v14  ;;  %v1941_v62 = vor.u32 %v2300_v60, %v1938_v61  ;;  %v2283_v0 = vld [vmem:[#allocation7 + $0x64] sm:$0xf0]  ;;  %v1928_v1 = vld [vmem:[#allocation7 + $0xe0] sm:$0xf]  ;;  %v2282_v4 = vld [vmem:[#allocation7 + $0x64] sm:$0xf] }
  0x43   : > { %v318_v19 = vrot.slane %v317_v17, 2  ;;  %v325_v20 = vadd.f32 %v324_v18, %v323_v16  ;;  %703 = vmatpush.bf16.msra.mxu3 %v1937_v58  ;;  %v1865_v2 = vor.u32 %v2283_v0, %v1864_v63  ;;  %v2299_v3 = vld [vmem:[#allocation7 + $0xe4] sm:$0xf0]  ;;  %v1866_v5 = vld [vmem:[#allocation7 + $0x68] sm:$0xf0]  ;;  %s2660_s22 = sshra.s32 %s1672_s10, 4  ;;  %s2661_s22 = int_to_ptr.hbm [resolvable:$true] %s2660_s22 }
  0x44   : > { %v1929_v6 = vor.u32 %v2299_v3, %v1928_v1  ;;  %v1869_v7 = vor.u32 %v2282_v4, %v1866_v5  ;;  %v2298_v8 = vld [vmem:[#allocation7 + $0xe4] sm:$0xf]  ;;  %v1930_v9 = vld [vmem:[#allocation7 + $0xe8] sm:$0xf0]  ;;  %v2281_v14 = vld [vmem:[#allocation7 + $0x54] sm:$0xf0]  ;;  %p2667_p5 = scmp.lt.s32.totalorder %s2661_s22, %s3046_s5 }
  0x45   : > { %v319_v21 = vadd.f32 %v318_v19, %v317_v17  ;;  %v326_v22 = vrot.slane %v325_v20, 2  ;;  %691 = vmatpush.bf16.msra.mxu2 %v1865_v2  ;;  %v1933_v13 = vor.u32 %v2298_v8, %v1930_v9  ;;  %v1920_v15 = vld [vmem:[#allocation7 + $0xd0] sm:$0xf]  ;;  %v2297_v16 = vld [vmem:[#allocation7 + $0xd4] sm:$0xf0]  ;;  %s2662_s25 = scalar_lea.hbm %s2661_s22, 8 }
  0x46   : > { %716 = vmatpush.bf16.msrb.mxu0 %v1877_v59  ;;  %729 = vmatpush.bf16.msrb.mxu1 %v1941_v62  ;;  %v2277_v51 = vld [vmem:[#allocation7 + $0x34] sm:$0xf0]  ;;  %v1904_v52 = vld [vmem:[#allocation7 + $0xb0] sm:$0xf]  ;;  %v2276_v58 = vld [vmem:[#allocation7 + $0x34] sm:$0xf]  ;;  %p2663_p1 = scmp.ne.s32.totalorder %s2661_s22, %s2662_s25 }
  0x47   : > { %v320_v23 = vrot.slane %v319_v21, 1  ;;  %v327_v24 = vadd.f32 %v326_v22, %v325_v20  ;;  %704 = vmatpush.bf16.msra.mxu3 %v1929_v6  ;;  %v1858_v22 = vld [vmem:[#allocation7 + $0x58] sm:$0xf0]  ;;  %v2293_v57 = vld [vmem:[#allocation7 + $0xb4] sm:$0xf0]  ;;  %s2666_s13 = scalar_lea.hbm %s3046_s5, 32 }
  0x48   : > { %v1905_v62 = vor.u32 %v2293_v57, %v1904_v52  ;;  %v1842_v63 = vld [vmem:[#allocation7 + $0x38] sm:$0xf0]  ;;  %v2292_v0 = vld [vmem:[#allocation7 + $0xb4] sm:$0xf]  ;;  %v1832_v6 = vld [vmem:[#allocation7 + $0x20] sm:$0xf]  ;;  %p2664_p3 = pnand %p2663_p1, %p2848_p2  ;;  %p2668_p6 = scmp.lt.s32.totalorder %s2666_s13, %s2662_s25 }
  0x49   : > { %v321_v25 = vadd.f32 %v320_v23, %v319_v21  ;;  %v328_v26 = vrot.slane %v327_v24, 1  ;;  %v2280_v21 = vld [vmem:[#allocation7 + $0x54] sm:$0xf]  ;;  %v1906_v1 = vld [vmem:[#allocation7 + $0xb8] sm:$0xf0]  ;;  %v1845_v8 = vor.u32 %v2276_v58, %v1842_v63 }
  0x4a   : > { %717 = vmatpush.bf16.msrb.mxu0 %v1869_v7  ;;  %730 = vmatpush.bf16.msrb.mxu1 %v1933_v13  ;;  %v2275_v7 = vld [vmem:[#allocation7 + $0x24] sm:$0xf0]  ;;  %v1909_v9 = vor.u32 %v2292_v0, %v1906_v1  ;;  %v2286_v57 = vld [vmem:[#allocation7 + $0x84] sm:$0xf]  ;;  %v1882_v58 = vld [vmem:[#allocation7 + $0x88] sm:$0xf0]  ;;  %p2665_p11 = pneg %p2664_p3  ;;  %p2669_p7 = por %p2668_p6, %p2667_p5 }
  0x4b   : > { %v329_v27 = vadd.f32 %v328_v26, %v327_v24  ;;  %v330_v28 = vmul.f32 0.125, %v321_v25  ;;  %v1921_v24 = vor.u32 %v2297_v16, %v1920_v15  ;;  %v1861_v25 = vor.u32 %v2280_v21, %v1858_v22  ;;  %v2296_v26 = vld [vmem:[#allocation7 + $0xd4] sm:$0xf]  ;;  %v2291_v13 = vld [vmem:[#allocation7 + $0xa4] sm:$0xf0] }
  0x4c   : > { %v1833_v21 = vor.u32 %v2275_v7, %v1832_v6  ;;  %v2287_v52 = vld [vmem:[#allocation7 + $0x84] sm:$0xf0]  ;;  %v1885_v0 = vor.u32 %v2286_v57, %v1882_v58  ;;  %p2670_p8 = pnand %p2669_p7, %p2665_p11 }
  0x4d   : > { %v331_v29 = vmul.f32 0.125, %v329_v27  ;;  %v332_v30 = vmul.f32 %v330_v28, %v330_v28  ;;  %v1922_v27 = vld [vmem:[#allocation7 + $0xd8] sm:$0xf0]  ;;  %705 = vmatpush.bf16.msra.mxu3 %v1921_v24  ;;  %v1898_v24 = vld [vmem:[#allocation7 + $0xa8] sm:$0xf0] }
  0x4e   : > { %718 = vmatpush.bf16.msrb.mxu0 %v1861_v25  ;;  %v1824_v25 = vld [vmem:[#allocation7 + $0x10] sm:$0xf] }
  0x4f   : > { %v333_v31 = vsub.f32 %v331_v29, %v332_v30 }
  0x51   : > { %v334_v32 = vmax.f32 %v333_v31, 0.0 }
  0x53   : > { %v335_v33 = vadd.f32 1e-05, %v334_v32 }
  0x55   : > { %2475 = vrsqrt.f32 %v335_v33  ;;  %vm342_vm1 = vweird.f32 %v335_v33 }
  0x5b   : > { %v2476_v34 = vpop.eup %2475 }
  0x5c   : > { %v337_v35 = vmul.f32 %v2476_v34, %v335_v33  ;;  %vm343_vm2 = vweird.f32 %v2476_v34  ;;  %v2279_v33 = vld [vmem:[#allocation7 + $0x44] sm:$0xf0] }
  0x5d   : > { %vm344_vm3 = vmor %vm342_vm1, %vm343_vm2 }
  0x5e   : > { %v338_v36 = vmul.f32 %v2476_v34, %v337_v35  ;;  %v1925_v35 = vor.u32 %v2296_v26, %v1922_v27  ;;  %v2273_v26 = vld [vmem:[#allocation7 + $0x14] sm:$0xf0] }
  0x60   : > { %v339_v37 = vmul.f32 0.5, %v338_v36  ;;  %731 = vmatpush.bf16.msrb.mxu1 %v1925_v35  ;;  %v1826_v35 = vld [vmem:[#allocation7 + $0x18] sm:$0xf0] }
  0x62   : > { %v340_v38 = vsub.f32 1.5, %v339_v37  ;;  %v2295_v37 = vld [vmem:[#allocation7 + $0xc4] sm:$0xf0] }
  0x64   : > { %v341_v40 = vmul.f32 %v2476_v34, %v340_v38  ;;  %v2278_v38 = vld [vmem:[#allocation7 + $0x44] sm:$0xf] }
  0x66   : > { %v345_v41 = vsel %vm344_vm3, %v2476_v34, %v341_v40  ;;  %v1912_v34 = vld [vmem:[#allocation7 + $0xc0] sm:$0xf]  ;;  %v1850_v40 = vld [vmem:[#allocation7 + $0x48] sm:$0xf0] }
  0x67   : > { %v346_v42 = vmul.f32 %v345_v41, %v2899_v39 }
  0x69   : > { %v347_v43 = vmul.f32 %v346_v42, %v330_v28  ;;  %v352_v44 = vperm.slane %v346_v42, 0  ;;  %v1848_v28 = vld [vmem:[#allocation7 + $0x40] sm:$0xf] }
  0x6a   : > { %v1849_v36 = vor.u32 %v2279_v33, %v1848_v28 }
  0x6b   : > { %v349_v45 = vrot.slane %v347_v43, 7  ;;  %v353_v47 = vmul.f32 %v352_v44, %v309_v10  ;;  %v1856_v10 = vld [vmem:[#allocation7 + $0x50] sm:$0xf] }
  0x6c   : > { %v1857_v23 = vor.u32 %v2281_v14, %v1856_v10  ;;  %v1896_v10 = vld [vmem:[#allocation7 + $0xa0] sm:$0xf]  ;;  %v2274_v14 = vld [vmem:[#allocation7 + $0x24] sm:$0xf] }
  0x6d   : > { %v351_v46 = vsub.f32 %v2899_v39, %v349_v45  ;;  %v2294_v45 = vld [vmem:[#allocation7 + $0xc4] sm:$0xf]  ;;  %v1897_v22 = vor.u32 %v2291_v13, %v1896_v10 }
  0x6e   : > { %692 = vmatpush.bf16.msra.mxu2 %v1857_v23 }
  0x6f   : > { %v354_v48 = vperm.slane %v351_v46, 1  ;;  %v1914_v46 = vld [vmem:[#allocation7 + $0xc8] sm:$0xf0] }
  0x71   : > { %v355_v49 = vadd.f32 %v354_v48, %v353_v47  ;;  %v1913_v47 = vor.u32 %v2295_v37, %v1912_v34  ;;  %v1853_v48 = vor.u32 %v2278_v38, %v1850_v40  ;;  %v2272_v34 = vld [vmem:[#allocation7 + $0x14] sm:$0xf] }
  0x72   : > { %693 = vmatpush.bf16.msra.mxu2 %v1849_v36 }
  0x73   : > { %v360_v50 = vpack.c.bf16 %v355_v49, %v355_v49  ;;  %v1917_v49 = vor.u32 %v2294_v45, %v1914_v46  ;;  %706 = vmatpush.bf16.msra.mxu3 %v1913_v47  ;;  %719 = vmatpush.bf16.msrb.mxu0 %v1853_v48  ;;  %v1829_v47 = vor.u32 %v2272_v34, %v1826_v35  ;;  %v1816_v48 = vld [vmem:[#allocation7] sm:$0xf] }
  0x75   : > { %1812 = vmatmul.msk.bf16.vlgmr.msra.gmra.mxu0 %vm314_vm0, %v360_v50  ;;  %1813 = vmatmul.msk.bf16.vlgmr.msra.gmra.mxu1 %vm314_vm0, %v360_v50  ;;  %v1840_v50 = vld [vmem:[#allocation7 + $0x30] sm:$0xf] }
  0x76   : > { %v1841_v61 = vor.u32 %v2277_v51, %v1840_v50  ;;  %732 = vmatpush.bf16.msrb.mxu1 %v1917_v49  ;;  %v2271_v49 = vld [vmem:[#allocation7 + $0x4] sm:$0xf0]  ;;  %v1880_v50 = vld [vmem:[#allocation7 + $0x80] sm:$0xf] }
  0x77   : > { %707 = vmatpush.bf16.msra.mxu3 %v1905_v62  ;;  %720 = vmatpush.bf16.msrb.mxu0 %v1845_v8  ;;  %v1881_v62 = vor.u32 %v2287_v52, %v1880_v50  ;;  %v2331_v52 = vld [vmem:[#allocation7 + $0x1e4] sm:$0xf0] }
  0x78   : > { %694 = vmatpush.bf16.msra.mxu2 %v1841_v61 }
  0x7a   : > { %733 = vmatpush.bf16.msrb.mxu1 %v1909_v9 }
  0x7b   : > { %708 = vmatpush.bf16.msra.mxu3 %v1897_v22 }
  0x7c   : > { %695 = vmatpush.bf16.msra.mxu2 %v1833_v21 }
  0xf2   : > { %v2905_v11 = vpop.f32.mrf.mxu0  ;;  %v2907_v12 = vpop.f32.mrf.mxu1 }
  0xf3   : > { %v410_v17 = vrot.slane %v2905_v11, 4  ;;  %v422_v18 = vmul.f32 %v2905_v11, %v2905_v11  ;;  %v416_v19 = vrot.slane %v2907_v12, 4  ;;  %v423_v20 = vmul.f32 %v2907_v12, %v2907_v12 }
  0xf5   : > { %v411_v29 = vadd.f32 %v410_v17, %v2905_v11  ;;  %v424_v30 = vrot.slane %v422_v18, 4  ;;  %v417_v31 = vadd.f32 %v416_v19, %v2907_v12  ;;  %v430_v32 = vrot.slane %v423_v20, 4  ;;  %v1834_v19 = vld [vmem:[#allocation7 + $0x28] sm:$0xf0] }
  0xf6   : > { %v1837_v23 = vor.u32 %v2274_v14, %v1834_v19  ;;  %v2925_v14 = vld [vmem:[#allocation10 + $0x8] sm:$0xff] }
  0xf7   : > { %v412_v41 = vrot.slane %v411_v29, 2  ;;  %v425_v42 = vadd.f32 %v424_v30, %v422_v18  ;;  %v418_v43 = vrot.slane %v417_v31, 2  ;;  %v431_v44 = vadd.f32 %v430_v32, %v423_v20  ;;  %v2290_v20 = vld [vmem:[#allocation7 + $0xa4] sm:$0xf]  ;;  %v2289_v32 = vld [vmem:[#allocation7 + $0x94] sm:$0xf0] }
  0xf8   : > { %v1901_v33 = vor.u32 %v2290_v20, %v1898_v24  ;;  %721 = vmatpush.bf16.msrb.mxu0 %v1837_v23  ;;  %v2931_v24 = vld [vmem:[#allocation10 + $0x10] sm:$0xff] }
  0xf9   : > { %v413_v53 = vadd.f32 %v412_v41, %v411_v29  ;;  %v426_v54 = vrot.slane %v425_v42, 2  ;;  %v419_v55 = vadd.f32 %v418_v43, %v417_v31  ;;  %v432_v56 = vrot.slane %v431_v44, 2  ;;  %v1888_v31 = vld [vmem:[#allocation7 + $0x90] sm:$0xf]  ;;  %v2288_v41 = vld [vmem:[#allocation7 + $0x94] sm:$0xf] }
  0xfa   : > { %v395_v59 = vpop.f32.mrf.mxu0  ;;  %v408_v60 = vpop.f32.mrf.mxu1  ;;  %v1825_v43 = vor.u32 %v2273_v26, %v1824_v25  ;;  %734 = vmatpush.bf16.msrb.mxu1 %v1901_v33  ;;  %v490_v34 = vperm.slane %v2931_v24, 3 }
  0xfb   : > { %v414_v2 = vrot.slane %v413_v53, 1  ;;  %v427_v3 = vadd.f32 %v426_v54, %v425_v42  ;;  %v420_v4 = vrot.slane %v419_v55, 1  ;;  %v433_v5 = vadd.f32 %v432_v56, %v431_v44  ;;  %v1890_v42 = vld [vmem:[#allocation7 + $0x98] sm:$0xf0]  ;;  %v1818_v54 = vld [vmem:[#allocation7 + $0x8] sm:$0xf0] }
  0xfc   : > { %v1889_v44 = vor.u32 %v2289_v32, %v1888_v31  ;;  %v1893_v51 = vor.u32 %v2288_v41, %v1890_v42  ;;  %696 = vmatpush.bf16.msra.mxu2 %v1825_v43  ;;  %v1817_v59 = vor.u32 %v2271_v49, %v1816_v48  ;;  %722 = vmatpush.bf16.msrb.mxu0 %v1829_v47  ;;  %v2332_v47 = vld [vmem:[#allocation7 + $0x1f4] sm:$0xf]  ;;  %v2066_v49 = vld [vmem:[#allocation7 + $0x1f8] sm:$0xf0] }
  0xfd   : > { %v415_v15 = vadd.f32 %v414_v2, %v413_v53  ;;  %v428_v16 = vrot.slane %v427_v3, 1  ;;  %v421_v17 = vadd.f32 %v420_v4, %v419_v55  ;;  %v434_v18 = vrot.slane %v433_v5, 1  ;;  %v2270_v53 = vld [vmem:[#allocation7 + $0x4] sm:$0xf] }
  0xfe   : > { %709 = vmatpush.bf16.msra.mxu3 %v1889_v44  ;;  %v1821_v63 = vor.u32 %v2270_v53, %v1818_v54  ;;  %735 = vmatpush.bf16.msrb.mxu1 %v1893_v51  ;;  %v2069_v50 = vor.u32 %v2332_v47, %v2066_v49  ;;  %v2056_v51 = vld [vmem:[#allocation7 + $0x1e0] sm:$0xf]  ;;  %v2330_v53 = vld [vmem:[#allocation7 + $0x1e4] sm:$0xf]  ;;  %v2032_v47 = vld [vmem:[#allocation7 + $0x1b0] sm:$0xf] }
  0xff   : > { %v429_v27 = vadd.f32 %v428_v16, %v427_v3  ;;  %v2917_v28 = vmul.f32 0.125, %v415_v15  ;;  %v435_v29 = vadd.f32 %v434_v18, %v433_v5  ;;  %v2919_v30 = vmul.f32 0.125, %v421_v17  ;;  %v2324_v49 = vld [vmem:[#allocation7 + $0x1b4] sm:$0xf] }
 0x100   : > { %697 = vmatpush.bf16.msra.mxu2 %v1817_v59  ;;  %723 = vmatpush.bf16.msrb.mxu0 %v1821_v63  ;;  %v2000_v59 = vld [vmem:[#allocation7 + $0x170] sm:$0xf] }
 0x101   : > { %v438_v36 = vmul.f32 0.125, %v429_v27  ;;  %v440_v37 = vmul.f32 %v2917_v28, %v2917_v28  ;;  %v439_v38 = vmul.f32 0.125, %v435_v29  ;;  %v441_v40 = vmul.f32 %v2919_v30, %v2919_v30  ;;  %v2934_v29 = vld [vmem:[#allocation10 + $0x18] sm:$0xff] }
 0x102   : > { %710 = vmatpush.bf16.msra.mxu3 %v1881_v62  ;;  %736 = vmatpush.bf16.msrb.mxu1 %v1885_v0  ;;  %v491_v35 = vperm.slane %v2934_v29, 3  ;;  %v2002_v0 = vld [vmem:[#allocation7 + $0x178] sm:$0xf0] }
 0x103   : > { %v442_v45 = vsub.f32 %v438_v36, %v440_v37  ;;  %v443_v46 = vsub.f32 %v439_v38, %v441_v40 }
 0x105   : > { %v444_v55 = vmax.f32 %v442_v45, 0.0  ;;  %v445_v56 = vmax.f32 %v443_v46, 0.0  ;;  %v2064_v45 = vld [vmem:[#allocation7 + $0x1f0] sm:$0xf]  ;;  %v2333_v46 = vld [vmem:[#allocation7 + $0x1f4] sm:$0xf0] }
 0x106   : > { %v2065_v48 = vor.u32 %v2333_v46, %v2064_v45  ;;  %1062 = vmatpush.bf16.msra.mxu1 %v2069_v50 }
 0x107   : > { %v446_v60 = vadd.f32 1e-05, %v444_v55  ;;  %v447_v61 = vadd.f32 1e-05, %v445_v56  ;;  %v2057_v55 = vor.u32 %v2331_v52, %v2056_v51  ;;  %v2058_v56 = vld [vmem:[#allocation7 + $0x1e8] sm:$0xf0] }
 0x108   : > { %1036 = vmatpush.bf16.msrb.mxu3 %v2065_v48  ;;  %v2061_v58 = vor.u32 %v2330_v53, %v2058_v56  ;;  %v2325_v48 = vld [vmem:[#allocation7 + $0x1b4] sm:$0xf0] }
 0x109   : > { %2477 = vrsqrt.f32 %v446_v60  ;;  %vm454_vm6 = vweird.f32 %v446_v60  ;;  %vm464_vm8 = vweird.f32 %v447_v61 }
 0x10a   : > { %2479 = vrsqrt.f32 %v447_v61  ;;  %1063 = vmatpush.bf16.msra.mxu1 %v2061_v58  ;;  %v2311_v58 = vld [vmem:[#allocation7 + $0x144] sm:$0xf0] }
 0x10c   : > { %1037 = vmatpush.bf16.msrb.mxu3 %v2057_v55  ;;  %v2033_v55 = vor.u32 %v2325_v48, %v2032_v47 }
 0x10f   : > { %v2478_v1 = vpop.eup %2477 }
 0x110   : > { %v2480_v2 = vpop.eup %2479  ;;  %v449_v3 = vmul.f32 %v2478_v1, %v446_v60  ;;  %vm455_vm4 = vweird.f32 %v2478_v1  ;;  %v2317_v60 = vld [vmem:[#allocation7 + $0x174] sm:$0xf0] }
 0x111   : > { %v459_v4 = vmul.f32 %v2480_v2, %v447_v61  ;;  %vm465_vm5 = vweird.f32 %v2480_v2  ;;  %vm456_vm7 = vmor %vm454_vm6, %vm455_vm4  ;;  %v2316_v61 = vld [vmem:[#allocation7 + $0x174] sm:$0xf]  ;;  %v2001_v63 = vor.u32 %v2317_v60, %v2000_v59  ;;  %v2310_v59 = vld [vmem:[#allocation7 + $0x144] sm:$0xf] }
 0x112   : > { %v450_v5 = vmul.f32 %v2478_v1, %v449_v3  ;;  %vm466_vm9 = vmor %vm464_vm8, %vm465_vm5  ;;  %v2329_v3 = vld [vmem:[#allocation7 + $0x1d4] sm:$0xf0] }
 0x113   : > { %v460_v6 = vmul.f32 %v2480_v2, %v459_v4  ;;  %v2328_v4 = vld [vmem:[#allocation7 + $0x1d4] sm:$0xf]  ;;  %1023 = vmatpush.bf16.msrb.mxu2 %v2001_v63 }
 0x114   : > { %v451_v7 = vmul.f32 0.5, %v450_v5 }
 0x115   : > { %v461_v8 = vmul.f32 0.5, %v460_v6 }
 0x116   : > { %v452_v9 = vsub.f32 1.5, %v451_v7 }
 0x117   : > { %v462_v10 = vsub.f32 1.5, %v461_v8  ;;  %v2050_v8 = vld [vmem:[#allocation7 + $0x1d8] sm:$0xf0] }
 0x118   : > { %v453_v13 = vmul.f32 %v2478_v1, %v452_v9  ;;  %v2053_v9 = vor.u32 %v2328_v4, %v2050_v8  ;;  %v2322_v8 = vld [vmem:[#allocation7 + $0x1a4] sm:$0xf] }
 0x119   : > { %v463_v15 = vmul.f32 %v2480_v2, %v462_v10  ;;  %v1992_v10 = vld [vmem:[#allocation7 + $0x160] sm:$0xf] }
 0x11a   : > { %v457_v16 = vsel %vm456_vm7, %v2478_v1, %v453_v13  ;;  %v2005_v1 = vor.u32 %v2316_v61, %v2002_v0  ;;  %v2315_v13 = vld [vmem:[#allocation7 + $0x164] sm:$0xf0]  ;;  %1064 = vmatpush.bf16.msra.mxu1 %v2053_v9 }
 0x11b   : > { %v468_v17 = vmul.f32 %v457_v16, %v2899_v39  ;;  %v467_v18 = vsel %vm466_vm9, %v2480_v2, %v463_v15  ;;  %v2048_v2 = vld [vmem:[#allocation7 + $0x1d0] sm:$0xf]  ;;  %v2314_v15 = vld [vmem:[#allocation7 + $0x164] sm:$0xf] }
 0x11c   : > { %v469_v19 = vmul.f32 %v467_v18, %v2925_v14  ;;  %v2049_v7 = vor.u32 %v2329_v3, %v2048_v2  ;;  %1049 = vmatpush.bf16.msra.mxu0 %v2005_v1  ;;  %v1978_v2 = vld [vmem:[#allocation7 + $0x148] sm:$0xf0] }
 0x11d   : > { %v470_v20 = vmul.f32 %v468_v17, %v2917_v28  ;;  %v480_v23 = vperm.slane %v468_v17, 2 }
 0x11e   : > { %v471_v21 = vmul.f32 %v469_v19, %v2919_v30  ;;  %v481_v26 = vperm.slane %v469_v19, 2  ;;  %1038 = vmatpush.bf16.msrb.mxu3 %v2049_v7  ;;  %v1993_v19 = vor.u32 %v2315_v13, %v1992_v10  ;;  %v2323_v7 = vld [vmem:[#allocation7 + $0x1a4] sm:$0xf0] }
 0x11f   : > { %v474_v22 = vrot.slane %v470_v20, 7  ;;  %v482_v32 = vmul.f32 %v480_v23, %v2905_v11  ;;  %v1994_v20 = vld [vmem:[#allocation7 + $0x168] sm:$0xf0]  ;;  %v2040_v23 = vld [vmem:[#allocation7 + $0x1c0] sm:$0xf] }
 0x120   : > { %v475_v25 = vrot.slane %v471_v21, 7  ;;  %v483_v28 = vmul.f32 %v481_v26, %v2907_v12  ;;  %v2326_v26 = vld [vmem:[#allocation7 + $0x1c4] sm:$0xf]  ;;  %1024 = vmatpush.bf16.msrb.mxu2 %v1993_v19  ;;  %v1968_v19 = vld [vmem:[#allocation7 + $0x130] sm:$0xf] }
 0x121   : > { %v478_v27 = vsub.f32 %v2899_v39, %v474_v22  ;;  %v1997_v22 = vor.u32 %v2314_v15, %v1994_v20  ;;  %v2309_v20 = vld [vmem:[#allocation7 + $0x134] sm:$0xf0] }
 0x122   : > { %v479_v31 = vsub.f32 %v2925_v14, %v475_v25  ;;  %v2327_v25 = vld [vmem:[#allocation7 + $0x1c4] sm:$0xf0] }
 0x123   : > { %v484_v33 = vperm.slane %v478_v27, 3  ;;  %1050 = vmatpush.bf16.msra.mxu0 %v1997_v22 }
 0x124   : > { %v485_v30 = vperm.slane %v479_v31, 3 }
 0x125   : > { %v486_v36 = vadd.f32 %v484_v33, %v482_v32 }
 0x126   : > { %v487_v37 = vadd.f32 %v485_v30, %v483_v28  ;;  %v2042_v28 = vld [vmem:[#allocation7 + $0x1c8] sm:$0xf0] }
 0x127   : > { %vm488_vm10 = vcmp.ge.f32.partialorder %v486_v36, 0.0  ;;  %v492_v38 = vmul.f32 %v490_v34, %v486_v36  ;;  %v2041_v34 = vor.u32 %v2327_v25, %v2040_v23 }
 0x128   : > { %vm489_vm11 = vcmp.ge.f32.partialorder %v487_v37, 0.0  ;;  %v493_v40 = vmul.f32 %v491_v35, %v487_v37  ;;  %v2045_v35 = vor.u32 %v2326_v26, %v2042_v28  ;;  %v2321_v28 = vld [vmem:[#allocation7 + $0x194] sm:$0xf0] }
 0x129   : > { %v494_v41 = vsel %vm488_vm10, %v486_v36, %v492_v38  ;;  %v1984_v36 = vld [vmem:[#allocation7 + $0x150] sm:$0xf]  ;;  %v2312_v38 = vld [vmem:[#allocation7 + $0x154] sm:$0xf]  ;;  %1039 = vmatpush.bf16.msrb.mxu3 %v2041_v34 }
 0x12a   : > { %v528_v42 = vpack.c.bf16 %v494_v41, %v494_v41  ;;  %v495_v43 = vsel %vm489_vm11, %v487_v37, %v493_v40  ;;  %v2313_v37 = vld [vmem:[#allocation7 + $0x154] sm:$0xf0]  ;;  %1065 = vmatpush.bf16.msra.mxu1 %v2045_v35  ;;  %v2016_v34 = vld [vmem:[#allocation7 + $0x190] sm:$0xf] }
 0x12b   : > { %v529_v44 = vpack.c.bf16 %v495_v43, %v495_v43  ;;  %v1985_v45 = vor.u32 %v2313_v37, %v1984_v36 }
 0x12c   : > { %698 = vmatmul.bf16.vlgmr.msra.gmra.mxu2 %v528_v42  ;;  %724 = vmatmul.bf16.vlgmr.msrb.gmra.mxu0 %v528_v42 }
 0x12d   : > { %711 = vmatmul.bf16.vlgmr.msra.gmra.mxu3 %v529_v44  ;;  %737 = vmatmul.bf16.vlgmr.msrb.gmra.mxu1 %v529_v44  ;;  %v1986_v44 = vld [vmem:[#allocation7 + $0x158] sm:$0xf0] }
 0x12e   : > { %v1989_v46 = vor.u32 %v2312_v38, %v1986_v44  ;;  %1025 = vmatpush.bf16.msrb.mxu2 %v1985_v45  ;;  %1040 = vmatpush.bf16.msrb.mxu3 %v2033_v55  ;;  %v2017_v38 = vor.u32 %v2321_v28, %v2016_v34  ;;  %v2306_v44 = vld [vmem:[#allocation7 + $0x124] sm:$0xf] }
 0x130   : > { %1051 = vmatpush.bf16.msra.mxu0 %v1989_v46 }
 0x1a9   : > { %v725_v54 = vpop.f32.mrf.mxu0 }
 0x1aa   : > { %v738_v57 = vpop.f32.mrf.mxu1 }
 0x1ab   : > { %v2941_v62 = vadd.f32 %v738_v57, %v725_v54  ;;  %v2034_v54 = vld [vmem:[#allocation7 + $0x1b8] sm:$0xf0]  ;;  %v1976_v57 = vld [vmem:[#allocation7 + $0x140] sm:$0xf] }
 0x1ac   : > { %v2037_v56 = vor.u32 %v2324_v49, %v2034_v54  ;;  %v1977_v4 = vor.u32 %v2311_v58, %v1976_v57  ;;  %v1962_v49 = vld [vmem:[#allocation7 + $0x128] sm:$0xf0] }
 0x1ad   : > { %v748_v5 = vrot.slane %v2941_v62, 4  ;;  %v755_v6 = vmul.f32 %v2941_v62, %v2941_v62  ;;  %v2010_v54 = vld [vmem:[#allocation7 + $0x188] sm:$0xf0] }
 0x1ae   : > { %1066 = vmatpush.bf16.msra.mxu1 %v2037_v56  ;;  %1026 = vmatpush.bf16.msrb.mxu2 %v1977_v4 }
 0x1af   : > { %v749_v16 = vadd.f32 %v748_v5, %v2941_v62  ;;  %v762_v17 = vrot.slane %v755_v6, 4  ;;  %v699_v18 = vpop.f32.mrf.mxu2  ;;  %v1981_v5 = vor.u32 %v2310_v59, %v1978_v2  ;;  %v1952_v59 = vld [vmem:[#allocation7 + $0x110] sm:$0xf] }
 0x1b0   : > { %v712_v21 = vpop.f32.mrf.mxu3 }
 0x1b1   : > { %v750_v27 = vrot.slane %v749_v16, 2  ;;  %v763_v31 = vadd.f32 %v762_v17, %v755_v6  ;;  %v2947_v32 = vadd.f32 %v712_v21, %v699_v18  ;;  %v727_v33 = vpop.f32.mrf.mxu0  ;;  %v2024_v6 = vld [vmem:[#allocation7 + $0x1a0] sm:$0xf]  ;;  %1052 = vmatpush.bf16.msra.mxu0 %v1981_v5  ;;  %v2308_v21 = vld [vmem:[#allocation7 + $0x134] sm:$0xf] }
 0x1b2   : > { %v740_v30 = vpop.f32.mrf.mxu1  ;;  %v2025_v17 = vor.u32 %v2323_v7, %v2024_v6  ;;  %v1944_v5 = vld [vmem:[#allocation7 + $0x100] sm:$0xf]  ;;  %v2303_v6 = vld [vmem:[#allocation7 + $0x104] sm:$0xf0]  ;;  %v2302_v7 = vld [vmem:[#allocation7 + $0x104] sm:$0xf] }
 0x1b3   : > { %v751_v40 = vadd.f32 %v750_v27, %v749_v16  ;;  %v764_v41 = vrot.slane %v763_v31, 2  ;;  %v742_v42 = vrot.slane %v2947_v32, 4  ;;  %v754_v43 = vmul.f32 %v2947_v32, %v2947_v32  ;;  %v2026_v16 = vld [vmem:[#allocation7 + $0x1a8] sm:$0xf0]  ;;  %v1970_v27 = vld [vmem:[#allocation7 + $0x138] sm:$0xf0] }
 0x1b4   : > { %v2029_v18 = vor.u32 %v2322_v8, %v2026_v16  ;;  %1041 = vmatpush.bf16.msrb.mxu3 %v2025_v17  ;;  %v1973_v33 = vor.u32 %v2308_v21, %v1970_v27  ;;  %v2320_v30 = vld [vmem:[#allocation7 + $0x194] sm:$0xf] }
 0x1b5   : > { %v752_v50 = vrot.slane %v751_v40, 1  ;;  %v765_v51 = vadd.f32 %v764_v41, %v763_v31  ;;  %v743_v52 = vadd.f32 %v742_v42, %v2947_v32  ;;  %v756_v53 = vrot.slane %v754_v43, 4  ;;  %v1960_v42 = vld [vmem:[#allocation7 + $0x120] sm:$0xf] }
 0x1b6   : > { %1067 = vmatpush.bf16.msra.mxu1 %v2029_v18  ;;  %v1969_v31 = vor.u32 %v2309_v20, %v1968_v19  ;;  %1053 = vmatpush.bf16.msra.mxu0 %v1973_v33 }
 0x1b7   : > { %v753_v60 = vadd.f32 %v752_v50, %v751_v40  ;;  %v766_v61 = vrot.slane %v765_v51, 1  ;;  %v744_v63 = vrot.slane %v743_v52, 2  ;;  %v757_v0 = vadd.f32 %v756_v53, %v754_v43  ;;  %v701_v1 = vpop.f32.mrf.mxu2  ;;  %v2018_v40 = vld [vmem:[#allocation7 + $0x198] sm:$0xf0]  ;;  %v2307_v43 = vld [vmem:[#allocation7 + $0x124] sm:$0xf0] }
 0x1b8   : > { %v714_v3 = vpop.f32.mrf.mxu3  ;;  %1027 = vmatpush.bf16.msrb.mxu2 %v1969_v31  ;;  %v2021_v41 = vor.u32 %v2320_v30, %v2018_v40  ;;  %v1961_v48 = vor.u32 %v2307_v43, %v1960_v42  ;;  %v2008_v50 = vld [vmem:[#allocation7 + $0x180] sm:$0xf]  ;;  %1042 = vmatpush.bf16.msrb.mxu3 %v2017_v38  ;;  %v2318_v53 = vld [vmem:[#allocation7 + $0x184] sm:$0xf]  ;;  %v823_v42 = vperm.slane %v2934_v29, 4 }
 0x1b9   : > { %v767_v9 = vadd.f32 %v766_v61, %v765_v51  ;;  %v2953_v10 = vmul.f32 0.125, %v753_v60  ;;  %v745_v13 = vadd.f32 %v744_v63, %v743_v52  ;;  %v758_v15 = vrot.slane %v757_v0, 2  ;;  %v2319_v52 = vld [vmem:[#allocation7 + $0x184] sm:$0xf0]  ;;  %v2305_v61 = vld [vmem:[#allocation7 + $0x114] sm:$0xf0] }
 0x1ba   : > { %1068 = vmatpush.bf16.msra.mxu1 %v2021_v41  ;;  %v1965_v51 = vor.u32 %v2306_v44, %v1962_v49  ;;  %v2009_v58 = vor.u32 %v2319_v52, %v2008_v50  ;;  %v2013_v60 = vor.u32 %v2318_v53, %v2010_v54  ;;  %v2304_v63 = vld [vmem:[#allocation7 + $0x114] sm:$0xf]  ;;  %v1953_v2 = vor.u32 %v2305_v61, %v1952_v59  ;;  %v2363_v61 = vld [vmem:[#allocation7 + $0x2e4] sm:$0xf0] }
 0x1bb   : > { %v771_v22 = vmul.f32 0.125, %v767_v9  ;;  %v773_v23 = vmul.f32 %v2953_v10, %v2953_v10  ;;  %v746_v25 = vrot.slane %v745_v13, 1  ;;  %v759_v26 = vadd.f32 %v758_v15, %v757_v0  ;;  %v1954_v0 = vld [vmem:[#allocation7 + $0x118] sm:$0xf0] }
 0x1bc   : > { %1028 = vmatpush.bf16.msrb.mxu2 %v1961_v48  ;;  %1054 = vmatpush.bf16.msra.mxu0 %v1965_v51  ;;  %v1957_v3 = vor.u32 %v2304_v63, %v1954_v0  ;;  %v1945_v9 = vor.u32 %v2303_v6, %v1944_v5  ;;  %v822_v52 = vperm.slane %v2931_v24, 4  ;;  %v2362_v0 = vld [vmem:[#allocation7 + $0x2e4] sm:$0xf]  ;;  %v2348_v5 = vld [vmem:[#allocation7 + $0x274] sm:$0xf] }
 0x1bd   : > { %v775_v35 = vsub.f32 %v771_v22, %v773_v23  ;;  %v747_v36 = vadd.f32 %v746_v25, %v745_v13  ;;  %v760_v37 = vrot.slane %v759_v26, 1  ;;  %1043 = vmatpush.bf16.msrb.mxu3 %v2009_v58  ;;  %v1946_v13 = vld [vmem:[#allocation7 + $0x108] sm:$0xf0]  ;;  %v2365_v58 = vld [vmem:[#allocation7 + $0x2f4] sm:$0xf0] }
 0x1be   : > { %1069 = vmatpush.bf16.msra.mxu1 %v2013_v60  ;;  %v1949_v15 = vor.u32 %v2302_v7, %v1946_v13  ;;  %v2184_v60 = vld [vmem:[#allocation7 + $0x2e0] sm:$0xf]  ;;  %v2130_v6 = vld [vmem:[#allocation7 + $0x278] sm:$0xf0]  ;;  %v2176_v13 = vld [vmem:[#allocation7 + $0x2d0] sm:$0xf] }
 0x1bf   : > { %v777_v45 = vmax.f32 %v775_v35, 0.0  ;;  %v761_v46 = vadd.f32 %v760_v37, %v759_v26  ;;  %v2957_v47 = vmul.f32 0.125, %v747_v36 }
 0x1c0   : > { %1029 = vmatpush.bf16.msrb.mxu2 %v1953_v2  ;;  %1055 = vmatpush.bf16.msra.mxu0 %v1957_v3  ;;  %v2128_v2 = vld [vmem:[#allocation7 + $0x270] sm:$0xf]  ;;  %v2185_v3 = vor.u32 %v2363_v61, %v2184_v60 }
 0x1c1   : > { %v779_v55 = vadd.f32 1e-05, %v777_v45  ;;  %v770_v56 = vmul.f32 0.125, %v761_v46  ;;  %v772_v57 = vmul.f32 %v2957_v47, %v2957_v47 }
 0x1c3   : > { %2481 = vrsqrt.f32 %v779_v55  ;;  %v774_v1 = vsub.f32 %v770_v56, %v772_v57  ;;  %vm796_vm13 = vweird.f32 %v779_v55  ;;  %v2192_v57 = vld [vmem:[#allocation7 + $0x2f0] sm:$0xf] }
 0x1c4   : > { %1030 = vmatpush.bf16.msrb.mxu2 %v1945_v9  ;;  %1056 = vmatpush.bf16.msra.mxu0 %v1949_v15  ;;  %v2193_v59 = vor.u32 %v2365_v58, %v2192_v57  ;;  %v2133_v9 = vor.u32 %v2348_v5, %v2130_v6  ;;  %v2361_v15 = vld [vmem:[#allocation7 + $0x2d4] sm:$0xf0]  ;;  %v2356_v57 = vld [vmem:[#allocation7 + $0x2b4] sm:$0xf]  ;;  %v2162_v58 = vld [vmem:[#allocation7 + $0x2b8] sm:$0xf0] }
 0x1c5   : > { %v776_v4 = vmax.f32 %v774_v1, 0.0  ;;  %v2186_v1 = vld [vmem:[#allocation7 + $0x2e8] sm:$0xf0] }
 0x1c6   : > { %1371 = vmatpush.bf16.msra.mxu3 %v2193_v59  ;;  %v2189_v7 = vor.u32 %v2362_v0, %v2186_v1  ;;  %v2096_v0 = vld [vmem:[#allocation7 + $0x230] sm:$0xf]  ;;  %v2341_v1 = vld [vmem:[#allocation7 + $0x234] sm:$0xf0] }
 0x1c7   : > { %v778_v8 = vadd.f32 1e-05, %v776_v4  ;;  %v2349_v4 = vld [vmem:[#allocation7 + $0x274] sm:$0xf0] }
 0x1c8   : > { %1384 = vmatpush.bf16.msrb.mxu0 %v2133_v9  ;;  %v2354_v9 = vld [vmem:[#allocation7 + $0x2a4] sm:$0xf] }
 0x1c9   : > { %v2482_v16 = vpop.eup %2481  ;;  %2483 = vrsqrt.f32 %v778_v8  ;;  %vm786_vm0 = vweird.f32 %v778_v8 }
 0x1ca   : > { %v791_v17 = vmul.f32 %v2482_v16, %v779_v55  ;;  %vm797_vm12 = vweird.f32 %v2482_v16  ;;  %1372 = vmatpush.bf16.msra.mxu3 %v2185_v3  ;;  %v2340_v3 = vld [vmem:[#allocation7 + $0x234] sm:$0xf] }
 0x1cb   : > { %vm798_vm14 = vmor %vm796_vm13, %vm797_vm12 }
 0x1cc   : > { %v792_v18 = vmul.f32 %v2482_v16, %v791_v17 }
 0x1ce   : > { %v793_v19 = vmul.f32 0.5, %v792_v18 }
 0x1cf   : > { %v2484_v20 = vpop.eup %2483 }
 0x1d0   : > { %v794_v21 = vsub.f32 1.5, %v793_v19  ;;  %v781_v22 = vmul.f32 %v2484_v20, %v778_v8  ;;  %vm787_vm15 = vweird.f32 %v2484_v20  ;;  %v2129_v8 = vor.u32 %v2349_v4, %v2128_v2  ;;  %v2178_v19 = vld [vmem:[#allocation7 + $0x2d8] sm:$0xf0]  ;;  %v2355_v2 = vld [vmem:[#allocation7 + $0x2a4] sm:$0xf0] }
 0x1d1   : > { %vm788_vm1 = vmor %vm786_vm0, %vm787_vm15  ;;  %v2098_v4 = vld [vmem:[#allocation7 + $0x238] sm:$0xf0] }
 0x1d2   : > { %v795_v23 = vmul.f32 %v2482_v16, %v794_v21  ;;  %v782_v25 = vmul.f32 %v2484_v20, %v781_v22  ;;  %v2347_v21 = vld [vmem:[#allocation7 + $0x264] sm:$0xf0]  ;;  %1358 = vmatpush.bf16.msra.mxu2 %v2129_v8  ;;  %v2165_v8 = vor.u32 %v2356_v57, %v2162_v58  ;;  %v2138_v57 = vld [vmem:[#allocation7 + $0x288] sm:$0xf0] }
 0x1d4   : > { %v799_v26 = vsel %vm798_vm14, %v2482_v16, %v795_v23  ;;  %v783_v27 = vmul.f32 0.5, %v782_v25  ;;  %v2360_v16 = vld [vmem:[#allocation7 + $0x2d4] sm:$0xf]  ;;  %v2346_v25 = vld [vmem:[#allocation7 + $0x264] sm:$0xf] }
 0x1d5   : > { %v801_v31 = vmul.f32 %v799_v26, %v2925_v14  ;;  %v2122_v26 = vld [vmem:[#allocation7 + $0x268] sm:$0xf0] }
 0x1d6   : > { %v784_v33 = vsub.f32 1.5, %v783_v27 }
 0x1d7   : > { %v803_v34 = vmul.f32 %v801_v31, %v2953_v10  ;;  %v813_v30 = vperm.slane %v801_v31, 4  ;;  %v2177_v31 = vor.u32 %v2361_v15, %v2176_v13  ;;  %v2154_v13 = vld [vmem:[#allocation7 + $0x2a8] sm:$0xf0]  ;;  %v2097_v15 = vor.u32 %v2341_v1, %v2096_v0 }
 0x1d8   : > { %v785_v28 = vmul.f32 %v2484_v20, %v784_v33  ;;  %v2125_v33 = vor.u32 %v2346_v25, %v2122_v26  ;;  %v2090_v25 = vld [vmem:[#allocation7 + $0x228] sm:$0xf0] }
 0x1d9   : > { %v807_v35 = vrot.slane %v803_v34, 7  ;;  %v815_v40 = vmul.f32 %v813_v30, %v2941_v62  ;;  %v2168_v34 = vld [vmem:[#allocation7 + $0x2c0] sm:$0xf]  ;;  %1373 = vmatpush.bf16.msra.mxu3 %v2177_v31  ;;  %v2157_v31 = vor.u32 %v2354_v9, %v2154_v13 }
 0x1da   : > { %v789_v36 = vsel %vm788_vm1, %v2484_v20, %v785_v28  ;;  %v2120_v20 = vld [vmem:[#allocation7 + $0x260] sm:$0xf]  ;;  %v2359_v28 = vld [vmem:[#allocation7 + $0x2c4] sm:$0xf0]  ;;  %1385 = vmatpush.bf16.msrb.mxu0 %v2125_v33  ;;  %v2144_v33 = vld [vmem:[#allocation7 + $0x290] sm:$0xf] }
 0x1db   : > { %v800_v37 = vmul.f32 %v789_v36, %v2899_v39  ;;  %v811_v38 = vsub.f32 %v2925_v14, %v807_v35  ;;  %v2121_v23 = vor.u32 %v2347_v21, %v2120_v20  ;;  %v2181_v35 = vor.u32 %v2360_v16, %v2178_v19  ;;  %v2112_v36 = vld [vmem:[#allocation7 + $0x250] sm:$0xf] }
 0x1dc   : > { %v2101_v16 = vor.u32 %v2340_v3, %v2098_v4 }
 0x1dd   : > { %v817_v41 = vperm.slane %v811_v38, 5  ;;  %v802_v43 = vmul.f32 %v800_v37, %v2957_v47  ;;  %v812_v44 = vperm.slane %v800_v37, 4  ;;  %v2345_v37 = vld [vmem:[#allocation7 + $0x254] sm:$0xf0]  ;;  %v2344_v38 = vld [vmem:[#allocation7 + $0x254] sm:$0xf]  ;;  %1359 = vmatpush.bf16.msra.mxu2 %v2121_v23 }
 0x1de   : > { %v2338_v23 = vld [vmem:[#allocation7 + $0x224] sm:$0xf] }
 0x1df   : > { %v819_v45 = vadd.f32 %v817_v41, %v815_v40  ;;  %v806_v10 = vrot.slane %v802_v43, 7  ;;  %v814_v49 = vmul.f32 %v812_v44, %v2947_v32  ;;  %v2194_v32 = vld [vmem:[#allocation7 + $0x2f8] sm:$0xf0]  ;;  %v2358_v40 = vld [vmem:[#allocation7 + $0x2c4] sm:$0xf]  ;;  %v2113_v43 = vor.u32 %v2345_v37, %v2112_v36 }
 0x1e0   : > { %v2170_v41 = vld [vmem:[#allocation7 + $0x2c8] sm:$0xf0]  ;;  %v2352_v37 = vld [vmem:[#allocation7 + $0x294] sm:$0xf] }
 0x1e1   : > { %vm821_vm2 = vcmp.ge.f32.partialorder %v819_v45, 0.0  ;;  %v825_v46 = vmul.f32 %v823_v42, %v819_v45  ;;  %v810_v48 = vsub.f32 %v2899_v39, %v806_v10  ;;  %v2364_v39 = vld [vmem:[#allocation7 + $0x2f4] sm:$0xf]  ;;  %1360 = vmatpush.bf16.msra.mxu2 %v2113_v43  ;;  %v2337_v43 = vld [vmem:[#allocation7 + $0x214] sm:$0xf0] }
 0x1e2   : > { %v2197_v63 = vor.u32 %v2364_v39, %v2194_v32 }
 0x1e3   : > { %v827_v50 = vsel %vm821_vm2, %v819_v45, %v825_v46  ;;  %v816_v51 = vperm.slane %v810_v48, 5  ;;  %v2160_v45 = vld [vmem:[#allocation7 + $0x2b0] sm:$0xf]  ;;  %v2169_v46 = vor.u32 %v2359_v28, %v2168_v34  ;;  %v2104_v48 = vld [vmem:[#allocation7 + $0x240] sm:$0xf] }
 0x1e4   : > { %v862_v53 = vpack.c.bf16 %v827_v50, %v827_v50  ;;  %1397 = vmatpush.bf16.msrb.mxu1 %v2197_v63  ;;  %v2342_v50 = vld [vmem:[#allocation7 + $0x244] sm:$0xf]  ;;  %v2152_v63 = vld [vmem:[#allocation7 + $0x2a0] sm:$0xf]  ;;  %v2353_v34 = vld [vmem:[#allocation7 + $0x294] sm:$0xf0] }
 0x1e5   : > { %v818_v62 = vadd.f32 %v816_v51, %v814_v49  ;;  %v2343_v49 = vld [vmem:[#allocation7 + $0x244] sm:$0xf0]  ;;  %1374 = vmatpush.bf16.msra.mxu3 %v2169_v46 }
 0x1e6   : > { %1044 = vmatmul.bf16.vlgmr.msrb.gmra.mxu3 %v862_v53  ;;  %1070 = vmatmul.bf16.vlgmr.msra.gmra.mxu1 %v862_v53  ;;  %v2105_v39 = vor.u32 %v2343_v49, %v2104_v48  ;;  %v2336_v48 = vld [vmem:[#allocation7 + $0x214] sm:$0xf]  ;;  %v2082_v49 = vld [vmem:[#allocation7 + $0x218] sm:$0xf0] }
 0x1e7   : > { %vm820_vm3 = vcmp.ge.f32.partialorder %v818_v62, 0.0  ;;  %v824_v54 = vmul.f32 %v822_v52, %v818_v62 }
 0x1e8   : > { %1398 = vmatpush.bf16.msrb.mxu1 %v2189_v7  ;;  %1361 = vmatpush.bf16.msra.mxu2 %v2105_v39  ;;  %v2085_v39 = vor.u32 %v2336_v48, %v2082_v49 }
 0x1e9   : > { %v826_v47 = vsel %vm820_vm3, %v818_v62, %v824_v54  ;;  %v2173_v62 = vor.u32 %v2358_v40, %v2170_v41  ;;  %v2357_v54 = vld [vmem:[#allocation7 + $0x2b4] sm:$0xf0]  ;;  %v2093_v41 = vor.u32 %v2338_v23, %v2090_v25 }
 0x1ea   : > { %v861_v55 = vpack.c.bf16 %v826_v47, %v826_v47  ;;  %v2106_v47 = vld [vmem:[#allocation7 + $0x248] sm:$0xf0] }
 0x1eb   : > { %v2109_v61 = vor.u32 %v2342_v50, %v2106_v47  ;;  %v2145_v50 = vor.u32 %v2353_v34, %v2144_v33  ;;  %v2351_v47 = vld [vmem:[#allocation7 + $0x284] sm:$0xf0] }
 0x1ec   : > { %1031 = vmatmul.bf16.vlgmr.msrb.gmra.mxu2 %v861_v55  ;;  %1057 = vmatmul.bf16.vlgmr.msra.gmra.mxu0 %v861_v55 }
 0x1ed   : > { %1399 = vmatpush.bf16.msrb.mxu1 %v2181_v35  ;;  %1362 = vmatpush.bf16.msra.mxu2 %v2097_v15 }
 0x1f1   : > { %1400 = vmatpush.bf16.msrb.mxu1 %v2173_v62 }
 0x1f5   : > { %1401 = vmatpush.bf16.msrb.mxu1 %v2165_v8 }
 0x1f9   : > { %1402 = vmatpush.bf16.msrb.mxu1 %v2157_v31 }
 0x263   : > { %v1071_v56 = vpop.f32.mrf.mxu1 }
 0x269   : > { %v1045_v17 = vpop.f32.mrf.mxu3  ;;  %v1058_v18 = vpop.f32.mrf.mxu0 }
 0x26a   : > { %v1059_v22 = vadd.f32 %v1058_v18, %v2907_v12  ;;  %v2114_v12 = vld [vmem:[#allocation7 + $0x258] sm:$0xf0]  ;;  %v2339_v18 = vld [vmem:[#allocation7 + $0x224] sm:$0xf0] }
 0x26b   : > { %v1073_v27 = vpop.f32.mrf.mxu1  ;;  %v2117_v44 = vor.u32 %v2344_v38, %v2114_v12  ;;  %v2146_v38 = vld [vmem:[#allocation7 + $0x298] sm:$0xf0]  ;;  %v2080_v12 = vld [vmem:[#allocation7 + $0x210] sm:$0xf] }
 0x26c   : > { %v1072_v30 = vadd.f32 %v1071_v56, %v1059_v22  ;;  %v2153_v27 = vor.u32 %v2355_v2, %v2152_v63  ;;  %v2081_v58 = vor.u32 %v2337_v43, %v2080_v12 }
 0x26d   : > { %1386 = vmatpush.bf16.msrb.mxu0 %v2117_v44 }
 0x26e   : > { %v2972_v42 = vmul.f32 0.5, %v1072_v30 }
 0x26f   : > { %v1032_v10 = vpop.f32.mrf.mxu2 }
 0x270   : > { %v1083_v51 = vrot.slane %v2972_v42, 4  ;;  %v1090_v52 = vmul.f32 %v2972_v42, %v2972_v42  ;;  %v1033_v53 = vadd.f32 %v1032_v10, %v2905_v11  ;;  %v2161_v11 = vor.u32 %v2357_v54, %v2160_v45  ;;  %v2136_v54 = vld [vmem:[#allocation7 + $0x280] sm:$0xf] }
 0x271   : > { %v1047_v55 = vpop.f32.mrf.mxu3  ;;  %v1060_v56 = vpop.f32.mrf.mxu0  ;;  %1387 = vmatpush.bf16.msrb.mxu0 %v2109_v61  ;;  %v2137_v63 = vor.u32 %v2351_v47, %v2136_v54 }
 0x272   : > { %v1084_v59 = vadd.f32 %v1083_v51, %v2972_v42  ;;  %v1097_v32 = vrot.slane %v1090_v52, 4  ;;  %v1046_v60 = vadd.f32 %v1045_v17, %v1033_v53  ;;  %v2088_v17 = vld [vmem:[#allocation7 + $0x220] sm:$0xf]  ;;  %1375 = vmatpush.bf16.msra.mxu3 %v2161_v11  ;;  %v2149_v51 = vor.u32 %v2352_v37, %v2146_v38  ;;  %v2350_v56 = vld [vmem:[#allocation7 + $0x284] sm:$0xf] }
 0x273   : > { %v2089_v40 = vor.u32 %v2339_v18, %v2088_v17  ;;  %v2141_v11 = vor.u32 %v2350_v56, %v2138_v57  ;;  %v2335_v17 = vld [vmem:[#allocation7 + $0x204] sm:$0xf0]  ;;  %v2334_v18 = vld [vmem:[#allocation7 + $0x204] sm:$0xf] }
 0x274   : > { %v1085_v5 = vrot.slane %v1084_v59, 2  ;;  %v1098_v6 = vadd.f32 %v1097_v32, %v1090_v52  ;;  %v2979_v7 = vmul.f32 0.5, %v1046_v60  ;;  %1403 = vmatpush.bf16.msrb.mxu1 %v2149_v51 }
 0x275   : > { %1388 = vmatpush.bf16.msrb.mxu0 %v2101_v16  ;;  %1363 = vmatpush.bf16.msra.mxu2 %v2089_v40  ;;  %v2072_v16 = vld [vmem:[#allocation7 + $0x200] sm:$0xf] }
 0x276   : > { %v1086_v19 = vadd.f32 %v1085_v5, %v1084_v59  ;;  %v1099_v20 = vrot.slane %v1098_v6, 2  ;;  %v1077_v21 = vrot.slane %v2979_v7, 4  ;;  %v1089_v22 = vmul.f32 %v2979_v7, %v2979_v7  ;;  %1376 = vmatpush.bf16.msra.mxu3 %v2153_v27 }
 0x277   : > { %v1034_v26 = vpop.f32.mrf.mxu2 }
 0x278   : > { %v1087_v28 = vrot.slane %v1086_v19, 1  ;;  %v1100_v30 = vadd.f32 %v1099_v20, %v1098_v6  ;;  %v1078_v35 = vadd.f32 %v1077_v21, %v2979_v7  ;;  %v1091_v36 = vrot.slane %v1089_v22, 4  ;;  %1404 = vmatpush.bf16.msrb.mxu1 %v2141_v11  ;;  %v2074_v20 = vld [vmem:[#allocation7 + $0x208] sm:$0xf0] }
 0x279   : > { %1389 = vmatpush.bf16.msrb.mxu0 %v2093_v41  ;;  %1364 = vmatpush.bf16.msra.mxu2 %v2081_v58 }
 0x27a   : > { %v1088_v44 = vadd.f32 %v1087_v28, %v1086_v19  ;;  %v1101_v45 = vrot.slane %v1100_v30, 1  ;;  %v1079_v10 = vrot.slane %v1078_v35, 2  ;;  %v1092_v46 = vadd.f32 %v1091_v36, %v1089_v22  ;;  %1377 = vmatpush.bf16.msra.mxu3 %v2145_v50 }
 0x27b   : > { %v2073_v19 = vor.u32 %v2335_v17, %v2072_v16  ;;  %v2077_v22 = vor.u32 %v2334_v18, %v2074_v20  ;;  %v1158_v50 = vperm.slane %v2934_v29, 5 }
 0x27c   : > { %v1102_v52 = vadd.f32 %v1101_v45, %v1100_v30  ;;  %v1080_v53 = vadd.f32 %v1079_v10, %v1078_v35  ;;  %v1093_v62 = vrot.slane %v1092_v46, 2  ;;  %v1104_v55 = vmul.f32 0.125, %v1088_v44  ;;  %v2493_v10 = vld [vmem:[#allocation10] sm:$0xff] }
 0x27d   : > { %1390 = vmatpush.bf16.msrb.mxu0 %v2085_v39  ;;  %1365 = vmatpush.bf16.msra.mxu2 %v2073_v19  ;;  %v2372_v19 = vld [vmem:[#allocation8 + $0x30] sm:$0xff] }
 0x27e   : > { %v1106_v59 = vmul.f32 0.125, %v1102_v52  ;;  %v1081_v32 = vrot.slane %v1080_v53, 1  ;;  %v1094_v60 = vadd.f32 %v1093_v62, %v1092_v46  ;;  %v1108_v61 = vmul.f32 %v1104_v55, %v1104_v55  ;;  %1378 = vmatpush.bf16.msra.mxu3 %v2137_v63 }
 0x280   : > { %v1082_v0 = vadd.f32 %v1081_v32, %v1080_v53  ;;  %v1095_v1 = vrot.slane %v1094_v60, 1  ;;  %v1110_v2 = vsub.f32 %v1106_v59, %v1108_v61  ;;  %v2381_v61 = vld [vmem:[#allocation8 + $0x78] sm:$0xff] }
 0x281   : > { %1391 = vmatpush.bf16.msrb.mxu0 %v2077_v22 }
 0x282   : > { %v1096_v3 = vadd.f32 %v1095_v1, %v1094_v60  ;;  %v1112_v4 = vmax.f32 %v1110_v2, 0.0  ;;  %v1103_v5 = vmul.f32 0.125, %v1082_v0  ;;  %1642 = vmatpush.bf16.msrb.mxu3 %v2381_v61 }
 0x284   : > { %v1105_v6 = vmul.f32 0.125, %v1096_v3  ;;  %v1114_v8 = vadd.f32 1e-05, %v1112_v4  ;;  %v1107_v9 = vmul.f32 %v1103_v5, %v1103_v5  ;;  %v2373_v4 = vld [vmem:[#allocation8 + $0x38] sm:$0xff] }
 0x285   : > { %1629 = vmatpush.bf16.msrb.mxu2 %v2373_v4 }
 0x286   : > { %2485 = vrsqrt.f32 %v1114_v8  ;;  %v1109_v13 = vsub.f32 %v1105_v6, %v1107_v9  ;;  %vm1131_vm5 = vweird.f32 %v1114_v8 }
 0x288   : > { %v1111_v15 = vmax.f32 %v1109_v13, 0.0  ;;  %v2379_v13 = vld [vmem:[#allocation8 + $0x68] sm:$0xff] }
 0x289   : > { %1630 = vmatpush.bf16.msrb.mxu2 %v2372_v19 }
 0x28a   : > { %v1113_v21 = vadd.f32 1e-05, %v1111_v15 }
 0x28c   : > { %v2486_v23 = vpop.eup %2485  ;;  %2487 = vrsqrt.f32 %v1113_v21  ;;  %vm1121_vm8 = vweird.f32 %v1113_v21 }
 0x28d   : > { %v1126_v25 = vmul.f32 %v2486_v23, %v1114_v8  ;;  %vm1132_vm4 = vweird.f32 %v2486_v23 }
 0x28e   : > { %vm1133_vm6 = vmor %vm1131_vm5, %vm1132_vm4 }
 0x28f   : > { %v1127_v26 = vmul.f32 %v2486_v23, %v1126_v25 }
 0x291   : > { %v1128_v27 = vmul.f32 0.5, %v1127_v26 }
 0x292   : > { %v2488_v31 = vpop.eup %2487 }
 0x293   : > { %v1129_v33 = vsub.f32 1.5, %v1128_v27  ;;  %v1116_v34 = vmul.f32 %v2488_v31, %v1113_v21  ;;  %vm1122_vm7 = vweird.f32 %v2488_v31 }
 0x294   : > { %vm1123_vm9 = vmor %vm1121_vm8, %vm1122_vm7 }
 0x295   : > { %v1130_v28 = vmul.f32 %v2486_v23, %v1129_v33  ;;  %v1117_v30 = vmul.f32 %v2488_v31, %v1116_v34 }
 0x297   : > { %v1134_v35 = vsel %vm1133_vm6, %v2486_v23, %v1130_v28  ;;  %v1118_v36 = vmul.f32 0.5, %v1117_v30  ;;  %v2378_v23 = vld [vmem:[#allocation8 + $0x60] sm:$0xff] }
 0x298   : > { %v1136_v37 = vmul.f32 %v1134_v35, %v2925_v14 }
 0x299   : > { %v1119_v38 = vsub.f32 1.5, %v1118_v36  ;;  %v2377_v36 = vld [vmem:[#allocation8 + $0x58] sm:$0xff] }
 0x29a   : > { %v1138_v40 = vmul.f32 %v1136_v37, %v1104_v55  ;;  %v1148_v43 = vperm.slane %v1136_v37, 6 }
 0x29b   : > { %v1120_v41 = vmul.f32 %v2488_v31, %v1119_v38 }
 0x29c   : > { %v1142_v12 = vrot.slane %v1138_v40, 7  ;;  %v1150_v48 = vmul.f32 %v1148_v43, %v2972_v42 }
 0x29d   : > { %v1124_v44 = vsel %vm1123_vm9, %v2488_v31, %v1120_v41  ;;  %v2371_v31 = vld [vmem:[#allocation8 + $0x28] sm:$0xff] }
 0x29e   : > { %v1146_v45 = vsub.f32 %v2925_v14, %v1142_v12  ;;  %v1135_v46 = vmul.f32 %v2493_v10, %v1124_v44  ;;  %v1157_v14 = vperm.slane %v2931_v24, 5  ;;  %v2380_v24 = vld [vmem:[#allocation8 + $0x70] sm:$0xff]  ;;  %1631 = vmatpush.bf16.msrb.mxu2 %v2371_v31  ;;  %v2370_v12 = vld [vmem:[#allocation8 + $0x20] sm:$0xff] }
 0x29f   : > { %1643 = vmatpush.bf16.msrb.mxu3 %v2380_v24 }
 0x2a0   : > { %v1152_v49 = vperm.slane %v1146_v45, 7  ;;  %v1137_v51 = vmul.f32 %v1135_v46, %v1103_v5  ;;  %v1147_v62 = vperm.slane %v1135_v46, 6  ;;  %v2376_v46 = vld [vmem:[#allocation8 + $0x50] sm:$0xff] }
 0x2a2   : > { %v1154_v52 = vadd.f32 %v1152_v49, %v1150_v48  ;;  %v1141_v53 = vrot.slane %v1137_v51, 7  ;;  %v1149_v56 = vmul.f32 %v1147_v62, %v2979_v7  ;;  %1632 = vmatpush.bf16.msrb.mxu2 %v2370_v12 }
 0x2a3   : > { %1644 = vmatpush.bf16.msrb.mxu3 %v2379_v13 }
 0x2a4   : > { %vm1156_vm10 = vcmp.ge.f32.partialorder %v1154_v52, 0.0  ;;  %v1160_v54 = vmul.f32 %v1158_v50, %v1154_v52  ;;  %v1145_v47 = vsub.f32 %v2493_v10, %v1141_v53 }
 0x2a6   : > { %v1162_v55 = vsel %vm1156_vm10, %v1154_v52, %v1160_v54  ;;  %v1151_v57 = vperm.slane %v1145_v47, 7  ;;  %v2369_v52 = vld [vmem:[#allocation8 + $0x18] sm:$0xff]  ;;  %v2375_v47 = vld [vmem:[#allocation8 + $0x48] sm:$0xff] }
 0x2a7   : > { %v1197_v58 = vpack.c.bf16 %v1162_v55, %v1162_v55  ;;  %1645 = vmatpush.bf16.msrb.mxu3 %v2378_v23  ;;  %1633 = vmatpush.bf16.msrb.mxu2 %v2369_v52 }
 0x2a8   : > { %v1153_v39 = vadd.f32 %v1151_v57, %v1149_v56 }
 0x2a9   : > { %1379 = vmatmul.bf16.vlgmr.msra.gmra.mxu3 %v1197_v58  ;;  %1405 = vmatmul.bf16.vlgmr.msrb.gmra.mxu1 %v1197_v58  ;;  %v2374_v58 = vld [vmem:[#allocation8 + $0x40] sm:$0xff] }
 0x2aa   : > { %vm1155_vm11 = vcmp.ge.f32.partialorder %v1153_v39, 0.0  ;;  %v1159_v59 = vmul.f32 %v1157_v14, %v1153_v39  ;;  %v2368_v14 = vld [vmem:[#allocation8 + $0x10] sm:$0xff] }
 0x2ab   : > { %1646 = vmatpush.bf16.msrb.mxu3 %v2377_v36  ;;  %1634 = vmatpush.bf16.msrb.mxu2 %v2368_v14 }
 0x2ac   : > { %v1161_v29 = vsel %vm1155_vm11, %v1153_v39, %v1159_v59 }
 0x2ad   : > { %v1196_v32 = vpack.c.bf16 %v1161_v29, %v1161_v29 }
 0x2af   : > { %1366 = vmatmul.bf16.vlgmr.msra.gmra.mxu2 %v1196_v32  ;;  %1392 = vmatmul.bf16.vlgmr.msrb.gmra.mxu0 %v1196_v32  ;;  %v2367_v32 = vld [vmem:[#allocation8 + $0x8] sm:$0xff] }
 0x2b0   : > { %1647 = vmatpush.bf16.msrb.mxu3 %v2376_v46  ;;  %1635 = vmatpush.bf16.msrb.mxu2 %v2367_v32 }
 0x2b4   : > { %1648 = vmatpush.bf16.msrb.mxu3 %v2375_v47 }
 0x2b8   : > { %1649 = vmatpush.bf16.msrb.mxu3 %v2374_v58 }
 0x326   : > { %v1406_v60 = vpop.f32.mrf.mxu1 }
 0x32c   : > { %v1380_v63 = vpop.f32.mrf.mxu3  ;;  %v1393_v0 = vpop.f32.mrf.mxu0 }
 0x32d   : > { %v1394_v1 = vadd.f32 %v1393_v0, %v2972_v42 }
 0x32e   : > { %v1408_v11 = vpop.f32.mrf.mxu1 }
 0x32f   : > { %v1407_v2 = vadd.f32 %v1406_v60, %v1394_v1 }
 0x331   : > { %v2992_v3 = vmul.f32 0.5, %v1407_v2 }
 0x332   : > { %v1367_v5 = vpop.f32.mrf.mxu2 }
 0x333   : > { %v1418_v6 = vrot.slane %v2992_v3, 4  ;;  %v1425_v8 = vmul.f32 %v2992_v3, %v2992_v3  ;;  %v1368_v9 = vadd.f32 %v1367_v5, %v2979_v7 }
 0x334   : > { %v1382_v15 = vpop.f32.mrf.mxu3  ;;  %v1395_v42 = vpop.f32.mrf.mxu0 }
 0x335   : > { %v1419_v16 = vadd.f32 %v1418_v6, %v2992_v3  ;;  %v1432_v17 = vrot.slane %v1425_v8, 4  ;;  %v1381_v18 = vadd.f32 %v1380_v63, %v1368_v9  ;;  %v2366_v63 = vld [vmem:[#allocation8] sm:$0xff]  ;;  %v2494_v42 = vld [vmem:[#allocation10 + $0x18] sm:$0xff] }
 0x336   : > { %1636 = vmatpush.bf16.msrb.mxu2 %v2366_v63 }
 0x337   : > { %v1420_v20 = vrot.slane %v1419_v16, 2  ;;  %v1433_v21 = vadd.f32 %v1432_v17, %v1425_v8  ;;  %v2999_v22 = vmul.f32 0.5, %v1381_v18 }
 0x339   : > { %v1421_v25 = vadd.f32 %v1420_v20, %v1419_v16  ;;  %v1434_v26 = vrot.slane %v1433_v21, 2  ;;  %v1412_v7 = vrot.slane %v2999_v22, 4  ;;  %v1424_v27 = vmul.f32 %v2999_v22, %v2999_v22 }
 0x33a   : > { %v1369_v33 = vpop.f32.mrf.mxu2 }
 0x33b   : > { %v1422_v34 = vrot.slane %v1421_v25, 1  ;;  %v1435_v28 = vadd.f32 %v1434_v26, %v1433_v21  ;;  %v1413_v30 = vadd.f32 %v1412_v7, %v2999_v22  ;;  %v1426_v35 = vrot.slane %v1424_v27, 4 }
 0x33d   : > { %v1423_v37 = vadd.f32 %v1422_v34, %v1421_v25  ;;  %v1436_v38 = vrot.slane %v1435_v28, 1  ;;  %v1414_v40 = vrot.slane %v1413_v30, 2  ;;  %v1427_v41 = vadd.f32 %v1426_v35, %v1424_v27  ;;  %v2495_v25 = vld [vmem:[#allocation10 + $0x10] sm:$0xff] }
 0x33e   : > { %v1493_v34 = vperm.slane %v2494_v42, 6  ;;  %v1492_v12 = vperm.slane %v2495_v25, 6 }
 0x33f   : > { %v1437_v43 = vadd.f32 %v1436_v38, %v1435_v28  ;;  %v1439_v44 = vmul.f32 0.125, %v1423_v37  ;;  %v1415_v45 = vadd.f32 %v1414_v40, %v1413_v30  ;;  %v1428_v10 = vrot.slane %v1427_v41, 2 }
 0x341   : > { %v1441_v48 = vmul.f32 0.125, %v1437_v43  ;;  %v1443_v49 = vmul.f32 %v1439_v44, %v1439_v44  ;;  %v1416_v50 = vrot.slane %v1415_v45, 1  ;;  %v1429_v51 = vadd.f32 %v1428_v10, %v1427_v41 }
 0x343   : > { %v1445_v53 = vsub.f32 %v1441_v48, %v1443_v49  ;;  %v1417_v62 = vadd.f32 %v1416_v50, %v1415_v45  ;;  %v1430_v54 = vrot.slane %v1429_v51, 1  ;;  %v1532_v48 = vperm.slane %v2495_v25, 2 }
 0x345   : > { %v1447_v55 = vmax.f32 %v1445_v53, 0.0  ;;  %v1431_v56 = vadd.f32 %v1430_v54, %v1429_v51  ;;  %v1438_v57 = vmul.f32 0.125, %v1417_v62 }
 0x347   : > { %v1449_v39 = vadd.f32 1e-05, %v1447_v55  ;;  %v1440_v59 = vmul.f32 0.125, %v1431_v56  ;;  %v1442_v29 = vmul.f32 %v1438_v57, %v1438_v57 }
 0x349   : > { %2489 = vrsqrt.f32 %v1449_v39  ;;  %v1444_v60 = vsub.f32 %v1440_v59, %v1442_v29  ;;  %vm1466_vm13 = vweird.f32 %v1449_v39 }
 0x34b   : > { %v1446_v61 = vmax.f32 %v1444_v60, 0.0 }
 0x34d   : > { %v1448_v0 = vadd.f32 1e-05, %v1446_v61 }
 0x34f   : > { %v2490_v1 = vpop.eup %2489  ;;  %2491 = vrsqrt.f32 %v1448_v0  ;;  %vm1456_vm0 = vweird.f32 %v1448_v0 }
 0x350   : > { %v1461_v11 = vmul.f32 %v2490_v1, %v1449_v39  ;;  %vm1467_vm12 = vweird.f32 %v2490_v1 }
 0x351   : > { %vm1468_vm14 = vmor %vm1466_vm13, %vm1467_vm12 }
 0x352   : > { %v1462_v2 = vmul.f32 %v2490_v1, %v1461_v11 }
 0x354   : > { %v1463_v24 = vmul.f32 0.5, %v1462_v2 }
 0x355   : > { %v2492_v4 = vpop.eup %2491 }
 0x356   : > { %v1464_v5 = vsub.f32 1.5, %v1463_v24  ;;  %v1451_v6 = vmul.f32 %v2492_v4, %v1448_v0  ;;  %vm1457_vm15 = vweird.f32 %v2492_v4 }
 0x357   : > { %vm1458_vm1 = vmor %vm1456_vm0, %vm1457_vm15 }
 0x358   : > { %v1465_v8 = vmul.f32 %v2490_v1, %v1464_v5  ;;  %v1452_v9 = vmul.f32 %v2492_v4, %v1451_v6 }
 0x35a   : > { %v1469_v13 = vsel %vm1468_vm14, %v2490_v1, %v1465_v8  ;;  %v1453_v15 = vmul.f32 0.5, %v1452_v9 }
 0x35b   : > { %v1471_v16 = vmul.f32 %v2494_v42, %v1469_v13 }
 0x35c   : > { %v1454_v17 = vsub.f32 1.5, %v1453_v15 }
 0x35d   : > { %v1473_v18 = vmul.f32 %v1471_v16, %v1439_v44  ;;  %v1483_v20 = vperm.slane %v1471_v16, 0 }
 0x35e   : > { %v1455_v19 = vmul.f32 %v2492_v4, %v1454_v17 }
 0x35f   : > { %v1477_v21 = vrot.slane %v1473_v18, 7  ;;  %v1485_v27 = vmul.f32 %v1483_v20, %v2992_v3 }
 0x360   : > { %v1459_v23 = vsel %vm1458_vm1, %v2492_v4, %v1455_v19 }
 0x361   : > { %v1470_v26 = vmul.f32 %v2495_v25, %v1459_v23  ;;  %v1481_v7 = vsub.f32 %v2494_v42, %v1477_v21 }
 0x363   : > { %v1472_v31 = vmul.f32 %v1470_v26, %v1438_v57  ;;  %v1487_v33 = vperm.slane %v1481_v7, 1  ;;  %v1482_v28 = vperm.slane %v1470_v26, 0 }
 0x365   : > { %v1489_v30 = vadd.f32 %v1487_v33, %v1485_v27  ;;  %v1476_v35 = vrot.slane %v1472_v31, 7  ;;  %v1484_v38 = vmul.f32 %v1482_v28, %v2999_v22 }
 0x367   : > { %vm1491_vm2 = vcmp.ge.f32.partialorder %v1489_v30, 0.0  ;;  %v1495_v36 = vmul.f32 %v1493_v34, %v1489_v30  ;;  %v1480_v37 = vsub.f32 %v2495_v25, %v1476_v35 }
 0x369   : > { %v1497_v40 = vsel %vm1491_vm2, %v1489_v30, %v1495_v36  ;;  %v1486_v41 = vperm.slane %v1480_v37, 1 }
 0x36a   : > { %v1531_v43 = vpack.c.bf16 %v1497_v40, %v1497_v40 }
 0x36b   : > { %v1488_v44 = vadd.f32 %v1486_v41, %v1484_v38 }
 0x36c   : > { %1650 = vmatmul.bf16.vlgmr.msrb.gmra.mxu3 %v1531_v43 }
 0x36d   : > { %vm1490_vm3 = vcmp.ge.f32.partialorder %v1488_v44, 0.0  ;;  %v1494_v3 = vmul.f32 %v1492_v12, %v1488_v44 }
 0x36f   : > { %v1496_v45 = vsel %vm1490_vm3, %v1488_v44, %v1494_v3 }
 0x370   : > { %v1530_v10 = vpack.c.bf16 %v1496_v45, %v1496_v45 }
 0x372   : > { %1637 = vmatmul.bf16.vlgmr.msrb.gmra.mxu2 %v1530_v10 }
 0x3ef   : > { %v1651_v46 = vpop.f32.mrf.mxu3 }
 0x3f5   : > { %v1638_v22 = vpop.f32.mrf.mxu2 }
 0x3f6   : > { %v1639_v49 = vadd.f32 %v1638_v22, %v1532_v48 }
 0x3f7   : > { %v1653_v50 = vpop.f32.mrf.mxu3 }
 0x3f8   : > { %v1652_v51 = vadd.f32 %v1651_v46, %v1639_v49 }
 0x3fa   : > { %1655 = vst [vmem:[%s307_s6] sm:$0xff] %v1652_v51 }
 0x3fb   : > { %2673 = shalt.err (!%p2670_p8)
}
 0x3fc   : > { %2400 = dma.vmem_to_hbm [thread:$0]  (%p2848_p2), %s1670_s8, 128, %s1672_s10, %s1657_s17  }
 0x3fd   : > { %v1640_v52 = vpop.f32.mrf.mxu2 }
 0x3fe PF: > { %p2432_p9 = scmp.ge.s32.totalorder %s2720_s21, 2  ;;  %s1683_s14 = sand.u32 1, %s2708_s18  }
 0x3ff   : > { %s1684_s12 = scalar_lea.sflag [#allocation4], %s1683_s14 }
 0x400   : > { %p2420_p10 = pnand %p2432_p9, %p2852_p4 }
 0x402   : > { %p2421_p12 = pneg %p2420_p10 }
 0x404   : > { %2703 = dma.done.wait (%p2421_p12), %s1684_s12, 128  }
 0x405   : > { %2705 = vsyncadd (%p2421_p12), %s1684_s12, 4294967168  ;;  %p20_p13 = scmp.ge.s32.totalorder %s2822_s9, 6   ;;  %s3054_s18 = smov %s2712_s19 }
 0x406   : > { %s3055_s19 = smov %s2716_s20  ;;  %s3056_s20 = smov %s2833_s11 }
 0x407   : > { %s3057_s21 = smov %s2822_s9  ;;  %22 = sbr.rel (!%p20_p13) target bundleno = 7 (0x7), region = 103 }
 0x40c   :  { %1690 = vsyncpa [#allocation3], 1 }
 0x40d   :  { %1692 = vsyncpa [#allocation3 + $0x1], 1 }
 0x40e   :  { %1693 = vsyncpa [#allocation6], 1 }
 0x40f   :  { %1694 = vsyncpa [#allocation9], 1 }
 0x410   :  { %1695 = vsyncpa [#allocation4], 1 }
 0x411   :  { %1697 = vsyncpa [#allocation4 + $0x1], 1 }

</bundles_post_ra>
